<compile_context>
chip_gen: v6e
topology: v6e:2x2x1
jax: 0.10.0
libtpu: 0.0.40
codegen_flags: <defaults>
</compile_context>

<pallas_src>
import functools

import jax
import jax.numpy as jnp
from jax.experimental import pallas as pl
from jax.experimental.pallas import tpu as pltpu

_EPS = 1e-5


@functools.lru_cache(maxsize=None)
def _vmem_limit_bytes():
    """Generation-aware scoped-VMEM budget (leave compiler scratch headroom)."""
    cap = None
    try:
        info = pltpu.get_tpu_info()
        cap = getattr(info, "vmem_capacity_bytes", None) or getattr(info, "vmem_bytes", None)
    except Exception:
        cap = None
    if not cap:
        return 64 * 1024 * 1024
    return int(max(32 * 1024 * 1024, min(int(cap) - 16 * 1024 * 1024, 96 * 1024 * 1024)))


def _pass1_kernel(xp_ref, xc_ref, xn_ref, ln_g_ref, ln_b_ref, w1_ref, b1_ref,
                  dw_ref, mid_ref, st_ref, *, kernel_size, halo):
    """One (batch, time-tile) step: LayerNorm -> fused pointwise#1 -> GLU ->
    depthwise conv over time (halo recompute), plus BatchNorm partial sums."""
    tt, D = xc_ref.shape
    pad = (kernel_size - 1) // 2
    j = pl.program_id(1)
    nt = pl.num_programs(1)

    # Haloed time window: [prev halo | current tile | next halo] rows of x.
    x_ext = jnp.concatenate(
        [xp_ref[...], xc_ref[...], xn_ref[...]], axis=0).astype(jnp.float32)

    # ---- LayerNorm over channels (fp32 statistics) ---------------------------
    mu = jnp.mean(x_ext, axis=-1, keepdims=True)
    xm = x_ext - mu
    var = jnp.mean(xm * xm, axis=-1, keepdims=True)
    h = xm * jax.lax.rsqrt(var + _EPS)
    h = h * ln_g_ref[...] + ln_b_ref[...]

    # ---- Pointwise conv #1 as ONE (D, 2D) matmul, then GLU --------------------
    # bf16 operands on the MXU, fp32 accumulation; GLU halves are lane-aligned
    # slices (D % 128 == 0 -> free).
    y = jnp.dot(h.astype(jnp.bfloat16), w1_ref[...],
                preferred_element_type=jnp.float32) + b1_ref[...]
    glu = y[:, :D] * jax.nn.sigmoid(y[:, D:])

    # ---- 'SAME' zero padding --------------------------------------------------
    # Only the halo rows of the first/last time tile fall outside the sequence:
    # one cheap select instead of per-tap full-array masks.
    r = jax.lax.broadcasted_iota(jnp.int32, (tt + 2 * halo, 1), 0)
    valid = ((r >= halo) | (j > 0)) & ((r < halo + tt) | (j < nt - 1))
    glu = jnp.where(valid, glu, 0.0)

    # ---- Depthwise conv over time: static shifted slices of the haloed tile ---
    dw = dw_ref[...].astype(jnp.float32)                     # (K, D)
    acc = glu[halo:halo + tt, :] * dw[pad:pad + 1, :]        # center tap
    for k in range(kernel_size):                             # static unrolled taps
        if k == pad:
            continue
        s = halo + k - pad
        acc = acc + glu[s:s + tt, :] * dw[k:k + 1, :]

    # bf16 writeback halves the intermediate's HBM traffic; BatchNorm partials
    # stay fp32 (computed from the fp32 accumulator, finalized in the wrapper).
    mid_ref[...] = acc.astype(mid_ref.dtype)
    st_ref[0:1, :] = jnp.sum(acc, axis=0, keepdims=True)
    st_ref[1:2, :] = jnp.sum(acc * acc, axis=0, keepdims=True)


def _pass2_kernel(mid_ref, sc_ref, sh_ref, w2_ref, b2_ref, o_ref):
    """Row tile: BatchNorm as one FMA (pre-folded scale/shift) -> Swish ->
    pointwise conv #2 on the MXU."""
    z = mid_ref[...].astype(jnp.float32) * sc_ref[...] + sh_ref[...]
    z = z * jax.nn.sigmoid(z)                                # Swish (fp32)
    out = jnp.dot(z.astype(jnp.bfloat16), w2_ref[...],
                  preferred_element_type=jnp.float32) + b2_ref[...]
    # TODO(synk): Dropout(p=0.1) omitted (identity / inference behaviour).
    o_ref[...] = out.astype(o_ref.dtype)


def _pick_time_tile(T, halo, D, budget):
    """Largest time tile (multiple of halo, divisor of T) fitting the budget."""
    for cand in (1024, 512, 256, 128, 64, 32, 16, 8):
        if cand < halo or cand % halo or T % cand:
            continue
        if cand * D * 48 + 8 * D * D <= budget:
            return cand
    return T


def _pick_row_tile(M, D, budget):
    """Largest lane-dense row tile for pass 2 that divides M and fits VMEM."""
    for cand in (2048, 1024, 512, 256, 128, 64, 32, 16, 8):
        if M % cand == 0 and cand * D * 28 + 4 * D * D <= budget:
            return cand
    return M


@functools.partial(jax.jit, static_argnames=("kernel_size", "time_block"))
def conformer_conv_module(x, params, *, kernel_size, time_block=None):
    """x: (B, T, D) float32 -> (B, T, D) float32 (channel-last throughout)."""
    B, T, D = x.shape
    assert kernel_size % 2 == 1, "kernel_size must be odd for 'SAME' padding"
    assert D % 128 == 0, "keep the channel dim lane-dense (pad to 128 outside)"
    assert T % 8 == 0

    f32, bf16 = jnp.float32, jnp.bfloat16
    pad = (kernel_size - 1) // 2
    halo = max(8, ((pad + 7) // 8) * 8)            # halo rows, sublane-aligned
    assert T % halo == 0 and T >= halo

    vlim = _vmem_limit_bytes()
    tt = _pick_time_tile(T, halo, D, vlim // 2) if time_block is None else int(time_block)
    assert T % tt == 0 and tt % halo == 0 and tt >= halo
    nt = T // tt
    rpt = tt // halo                               # current/halo block-size ratio

    w1 = params["w1"].astype(bf16)                 # (D, 2D): fused GLU matmul
    w2 = params["w2"].astype(bf16)

    cp1 = pltpu.CompilerParams(dimension_semantics=("parallel", "parallel"),
                               vmem_limit_bytes=vlim)
    cp2 = pltpu.CompilerParams(dimension_semantics=("parallel",),
                               vmem_limit_bytes=vlim)

    def const2d(shape):
        # Constant index_map -> parameter stays VMEM-resident across grid steps.
        return pl.BlockSpec(shape, lambda b, j: (0, 0))

    # --- Pass 1: grid over (batch, time tiles). Halo rows of x are re-fetched
    # from the neighbouring tiles (clamped index maps) and recomputed through
    # LayerNorm/pointwise#1/GLU so the depthwise conv sees valid neighbours. ----
    mid, stats = pl.pallas_call(
        functools.partial(_pass1_kernel, kernel_size=kernel_size, halo=halo),
        grid=(B, nt),
        in_specs=[
            pl.BlockSpec((None, halo, D),
                         lambda b, j: (b, jnp.maximum(j * rpt - 1, 0), 0)),          # prev halo
            pl.BlockSpec((None, tt, D), lambda b, j: (b, j, 0)),                     # current tile
            pl.BlockSpec((None, halo, D),
                         lambda b, j: (b, jnp.minimum((j + 1) * rpt, T // halo - 1), 0)),  # next halo
            const2d((1, D)), const2d((1, D)),                 # LayerNorm gamma/beta
            const2d((D, 2 * D)), const2d((1, 2 * D)),         # pointwise#1 weight/bias
            const2d((kernel_size, D)),                        # depthwise weights
        ],
        out_specs=(
            pl.BlockSpec((None, tt, D), lambda b, j: (b, j, 0)),          # bf16 mid
            pl.BlockSpec((None, 2, D), lambda b, j: (b * nt + j, 0, 0)),  # BN partials
        ),
        out_shape=(
            jax.ShapeDtypeStruct((B, T, D), bf16),
            jax.ShapeDtypeStruct((B * nt, 2, D), f32),
        ),
        compiler_params=cp1,
    )(x, x, x, params["ln_g"], params["ln_b"], w1, params["b1"], params["dw"])

    # --- Finalize BatchNorm once (training-mode batch statistics), folded into
    # a per-channel scale/shift so pass 2 does a single FMA per element. --------
    cnt = float(B * T)
    mean = jnp.sum(stats[:, 0, :], axis=0) / cnt               # (D,)
    ex2 = jnp.sum(stats[:, 1, :], axis=0) / cnt
    rstd = jax.lax.rsqrt(ex2 - mean * mean + _EPS)             # biased variance
    bn_scale = (params["bn_g"] * rstd).astype(f32)             # (1, D)
    bn_shift = (params["bn_b"] - params["bn_g"] * rstd * mean).astype(f32)

    # --- Pass 2: large lane-dense row tiles of the flattened (B*T, D) slab. ----
    M = B * T
    bm = _pick_row_tile(M, D, vlim // 2)
    out2d = pl.pallas_call(
        _pass2_kernel,
        grid=(M // bm,),
        in_specs=[
            pl.BlockSpec((bm, D), lambda m: (m, 0)),           # bf16 mid rows
            pl.BlockSpec((1, D), lambda m: (0, 0)),            # BN scale
            pl.BlockSpec((1, D), lambda m: (0, 0)),            # BN shift
            pl.BlockSpec((D, D), lambda m: (0, 0)),            # w2
            pl.BlockSpec((1, D), lambda m: (0, 0)),            # b2
        ],
        out_specs=pl.BlockSpec((bm, D), lambda m: (m, 0)),
        out_shape=jax.ShapeDtypeStruct((M, D), f32),
        compiler_params=cp2,
    )(mid.reshape(M, D), bn_scale, bn_shift, w2, params["b2"])

    return out2d.reshape(B, T, D)


def init_params(key, D, K):
    """Deterministic synthetic parameters (shapes follow the PyTorch module)."""
    ks = jax.random.split(key, 5)
    return dict(
        # LayerNorm(in_channels): gamma=1, beta=0
        ln_g=jnp.ones((1, D), jnp.float32),
        ln_b=jnp.zeros((1, D), jnp.float32),
        # PointwiseConv1d(D, 2D): torch weight (2D, D, 1) stored transposed as (D, 2D)
        w1=jax.random.normal(ks[0], (D, 2 * D), jnp.float32) * 0.1,
        b1=jax.random.normal(ks[1], (1, 2 * D), jnp.float32) * 0.1,
        # DepthwiseConv1d(D, D, K): torch weight (D, 1, K) stored as (K, D), no bias
        dw=jax.random.normal(ks[2], (K, D), jnp.float32) * 0.1,
        # BatchNorm1d(D): gamma=1, beta=0
        bn_g=jnp.ones((1, D), jnp.float32),
        bn_b=jnp.zeros((1, D), jnp.float32),
        # PointwiseConv1d(D, D): torch weight (D, D, 1) stored transposed as (D, D)
        w2=jax.random.normal(ks[3], (D, D), jnp.float32) * 0.1,
        b2=jax.random.normal(ks[4], (1, D), jnp.float32) * 0.1,
    )


def _reference(x, p, K):
    """Pure-JAX fp32 reference mirroring the PyTorch (B, C, T) layout with lax.conv."""
    B, T, D = x.shape
    eps = 1e-5
    mu = x.mean(-1, keepdims=True)
    var = ((x - mu) ** 2).mean(-1, keepdims=True)
    xn = (x - mu) / jnp.sqrt(var + eps) * p["ln_g"][0] + p["ln_b"][0]
    xt = jnp.transpose(xn, (0, 2, 1))                              # (B, D, T)
    w1 = jnp.transpose(p["w1"])[:, :, None]                        # (2D, D, 1)
    y = jax.lax.conv_general_dilated(
        xt, w1, (1,), "VALID",
        dimension_numbers=("NCH", "OIH", "NCH")) + p["b1"][0][None, :, None]
    a, g = y[:, :D], y[:, D:]
    glu = a * jax.nn.sigmoid(g)
    dw = jnp.transpose(p["dw"])[:, None, :]                        # (D, 1, K)
    pad = (K - 1) // 2
    z = jax.lax.conv_general_dilated(
        glu, dw, (1,), [(pad, pad)],
        dimension_numbers=("NCH", "OIH", "NCH"), feature_group_count=D)
    bm = z.mean(axis=(0, 2), keepdims=True)
    bv = ((z - bm) ** 2).mean(axis=(0, 2), keepdims=True)
    z = (z - bm) / jnp.sqrt(bv + eps)
    z = z * p["bn_g"][0][None, :, None] + p["bn_b"][0][None, :, None]
    z = z * jax.nn.sigmoid(z)
    w2 = jnp.transpose(p["w2"])[:, :, None]                        # (D, D, 1)
    out = jax.lax.conv_general_dilated(
        z, w2, (1,), "VALID",
        dimension_numbers=("NCH", "OIH", "NCH")) + p["b2"][0][None, :, None]
    return jnp.transpose(out, (0, 2, 1))                           # (B, T, D)


if __name__ == "__main__":
    # Small but lane/MXU-friendly shapes: D multiple of 128, T multiple of 8,
    # odd kernel_size.
    B, T, D, K = 2, 256, 128, 7
    key = jax.random.PRNGKey(0)
    kx, kp = jax.random.split(key)
    x = jax.random.normal(kx, (B, T, D), jnp.float32)
    params = init_params(kp, D, K)

    ref = jax.block_until_ready(_reference(x, params, K))

    # Multi-tile path: time_block=64 -> 4 time tiles per batch row, exercising
    # the halo fetch/recompute and edge masking.
    out = jax.block_until_ready(
        conformer_conv_module(x, params, kernel_size=K, time_block=64))
    assert out.shape == (B, T, D)
    err = float(jnp.max(jnp.abs(out - ref)))
    # bf16 MXU operands + bf16 intermediate vs all-fp32 reference -> loose tol.
    assert jnp.allclose(out, ref, atol=5e-2, rtol=5e-2), f"max |err| = {err}"

    # Auto-tiled path (single time tile at this size).
    out2 = jax.block_until_ready(conformer_conv_module(x, params, kernel_size=K))
    err2 = float(jnp.max(jnp.abs(out2 - ref)))
    assert jnp.allclose(out2, ref, atol=5e-2, rtol=5e-2), f"max |err| = {err2}"

    print("KERNEL_OK")
</pallas_src>

<mosaic_0001>
module attributes {stable_mosaic.version = 11 : i64} {
  func.func @_pass1_kernel(%arg0: i32, %arg1: i32, %arg2: memref<1x8x128xf32, #tpu.memory_space<vmem>>, %arg3: memref<1x64x128xf32, #tpu.memory_space<vmem>>, %arg4: memref<1x8x128xf32, #tpu.memory_space<vmem>>, %arg5: memref<1x128xf32, #tpu.memory_space<vmem>>, %arg6: memref<1x128xf32, #tpu.memory_space<vmem>>, %arg7: memref<128x256xbf16, #tpu.memory_space<vmem>>, %arg8: memref<1x256xf32, #tpu.memory_space<vmem>>, %arg9: memref<7x128xf32, #tpu.memory_space<vmem>>, %arg10: memref<1x64x128xbf16, #tpu.memory_space<vmem>>, %arg11: memref<1x2x128xf32, #tpu.memory_space<vmem>>) attributes {dimension_semantics = [#tpu.dimension_semantics<parallel>, #tpu.dimension_semantics<parallel>], iteration_bounds = array<i64: 2, 4>, scalar_prefetch = 0 : i64, scratch_operands = 0 : i64, tpu.core_type = #tpu.core_type<tc>, window_params = [{transform_indices = @transform_0, window_bounds = array<i64: 1, 8, 128>}, {transform_indices = @transform_1, window_bounds = array<i64: 1, 64, 128>}, {transform_indices = @transform_2, window_bounds = array<i64: 1, 8, 128>}, {pipeline_mode = #tpu.pipeline_mode<synchronous>, transform_indices = @transform_3, window_bounds = array<i64: 1, 128>}, {pipeline_mode = #tpu.pipeline_mode<synchronous>, transform_indices = @transform_4, window_bounds = array<i64: 1, 128>}, {pipeline_mode = #tpu.pipeline_mode<synchronous>, transform_indices = @transform_5, window_bounds = array<i64: 128, 256>}, {pipeline_mode = #tpu.pipeline_mode<synchronous>, transform_indices = @transform_6, window_bounds = array<i64: 1, 256>}, {pipeline_mode = #tpu.pipeline_mode<synchronous>, transform_indices = @transform_7, window_bounds = array<i64: 7, 128>}, {transform_indices = @transform_8, window_bounds = array<i64: 1, 64, 128>}, {transform_indices = @transform_9, window_bounds = array<i64: 1, 2, 128>}]} {
    %c0 = arith.constant 0 : index
    %c0_0 = arith.constant 0 : index
    %c0_1 = arith.constant 0 : index
    %0 = vector.load %arg2[%c0, %c0_0, %c0_1] : memref<1x8x128xf32, #tpu.memory_space<vmem>>, vector<1x8x128xf32>
    %1 = vector.shape_cast %0 : vector<1x8x128xf32> to vector<8x128xf32>
    %c0_2 = arith.constant 0 : index
    %c0_3 = arith.constant 0 : index
    %c0_4 = arith.constant 0 : index
    %2 = vector.load %arg3[%c0_2, %c0_3, %c0_4] : memref<1x64x128xf32, #tpu.memory_space<vmem>>, vector<1x64x128xf32>
    %3 = vector.shape_cast %2 : vector<1x64x128xf32> to vector<64x128xf32>
    %c0_5 = arith.constant 0 : index
    %c0_6 = arith.constant 0 : index
    %c0_7 = arith.constant 0 : index
    %4 = vector.load %arg4[%c0_5, %c0_6, %c0_7] : memref<1x8x128xf32, #tpu.memory_space<vmem>>, vector<1x8x128xf32>
    %5 = vector.shape_cast %4 : vector<1x8x128xf32> to vector<8x128xf32>
    %6 = tpu.concatenate %1, %3, %5 in 0 : vector<8x128xf32>, vector<64x128xf32>, vector<8x128xf32> -> vector<80x128xf32>
    %cst = arith.constant dense<0.000000e+00> : vector<80xf32>
    %7 = vector.multi_reduction <add>, %6, %cst [1] : vector<80x128xf32> to vector<80xf32>
    %8 = vector.shape_cast %7 : vector<80xf32> to vector<80x1xf32>
    %cst_8 = arith.constant 1.280000e+02 : f32
    %9 = vector.broadcast %cst_8 : f32 to vector<80x1xf32>
    %10 = arith.divf %8, %9 : vector<80x1xf32>
    %11 = vector.broadcast %10 : vector<80x1xf32> to vector<80x128xf32>
    %12 = arith.subf %6, %11 : vector<80x128xf32>
    %13 = arith.mulf %12, %12 : vector<80x128xf32>
    %cst_9 = arith.constant dense<0.000000e+00> : vector<80xf32>
    %14 = vector.multi_reduction <add>, %13, %cst_9 [1] : vector<80x128xf32> to vector<80xf32>
    %15 = vector.shape_cast %14 : vector<80xf32> to vector<80x1xf32>
    %cst_10 = arith.constant 1.280000e+02 : f32
    %16 = vector.broadcast %cst_10 : f32 to vector<80x1xf32>
    %17 = arith.divf %15, %16 : vector<80x1xf32>
    %cst_11 = arith.constant 9.99999974E-6 : f32
    %18 = vector.broadcast %cst_11 : f32 to vector<80x1xf32>
    %19 = arith.addf %17, %18 : vector<80x1xf32>
    %20 = math.rsqrt %19 : vector<80x1xf32>
    %21 = vector.broadcast %20 : vector<80x1xf32> to vector<80x128xf32>
    %22 = arith.mulf %12, %21 : vector<80x128xf32>
    %c0_12 = arith.constant 0 : index
    %c0_13 = arith.constant 0 : index
    %23 = vector.load %arg5[%c0_12, %c0_13] : memref<1x128xf32, #tpu.memory_space<vmem>>, vector<1x128xf32>
    %24 = vector.broadcast %23 : vector<1x128xf32> to vector<80x128xf32>
    %25 = arith.mulf %22, %24 : vector<80x128xf32>
    %c0_14 = arith.constant 0 : index
    %c0_15 = arith.constant 0 : index
    %26 = vector.load %arg6[%c0_14, %c0_15] : memref<1x128xf32, #tpu.memory_space<vmem>>, vector<1x128xf32>
    %27 = vector.broadcast %26 : vector<1x128xf32> to vector<80x128xf32>
    %28 = arith.addf %25, %27 : vector<80x128xf32>
    %29 = arith.truncf %28 : vector<80x128xf32> to vector<80x128xbf16>
    %c0_16 = arith.constant 0 : index
    %c0_17 = arith.constant 0 : index
    %30 = vector.load %arg7[%c0_16, %c0_17] : memref<128x256xbf16, #tpu.memory_space<vmem>>, vector<128x256xbf16>
    %cst_18 = arith.constant dense<0.000000e+00> : vector<80x256xf32>
    %31 = tpu.matmul %29, %30, %cst_18 {dimension_numbers = #tpu.dot_dimension_numbers<[1], [0], [0], [1], [0, 0, 1, 1], [], []>} : vector<80x128xbf16>, vector<128x256xbf16>, vector<80x256xf32> -> vector<80x256xf32>
    %c0_19 = arith.constant 0 : index
    %c0_20 = arith.constant 0 : index
    %32 = vector.load %arg8[%c0_19, %c0_20] : memref<1x256xf32, #tpu.memory_space<vmem>>, vector<1x256xf32>
    %33 = vector.broadcast %32 : vector<1x256xf32> to vector<80x256xf32>
    %34 = arith.addf %31, %33 : vector<80x256xf32>
    %35 = vector.extract_strided_slice %34 {offsets = [0, 0], sizes = [80, 128], strides = [1, 1]} : vector<80x256xf32> to vector<80x128xf32>
    %36 = vector.extract_strided_slice %34 {offsets = [0, 128], sizes = [80, 128], strides = [1, 1]} : vector<80x256xf32> to vector<80x128xf32>
    %37 = arith.negf %36 : vector<80x128xf32>
    %38 = math.exp %37 : vector<80x128xf32>
    %cst_21 = arith.constant 1.000000e+00 : f32
    %39 = vector.broadcast %cst_21 : f32 to vector<80x128xf32>
    %40 = arith.addf %39, %38 : vector<80x128xf32>
    %41 = arith.divf %39, %40 : vector<80x128xf32>
    %42 = arith.mulf %35, %41 : vector<80x128xf32>
    %43 = tpu.iota {dimensions = array<i32: 0>} : vector<80x1xi32>
    %c8_i32 = arith.constant 8 : i32
    %44 = vector.broadcast %c8_i32 : i32 to vector<80x1xi32>
    %45 = arith.cmpi sge, %43, %44 : vector<80x1xi32>
    %c0_i32 = arith.constant 0 : i32
    %46 = arith.cmpi sgt, %arg1, %c0_i32 : i32
    %47 = vector.broadcast %46 : i1 to vector<80x1xi1>
    %48 = arith.ori %45, %47 : vector<80x1xi1>
    %c72_i32 = arith.constant 72 : i32
    %49 = vector.broadcast %c72_i32 : i32 to vector<80x1xi32>
    %50 = arith.cmpi slt, %43, %49 : vector<80x1xi32>
    %c3_i32 = arith.constant 3 : i32
    %51 = arith.cmpi slt, %arg1, %c3_i32 : i32
    %52 = vector.broadcast %51 : i1 to vector<80x1xi1>
    %53 = arith.ori %50, %52 : vector<80x1xi1>
    %54 = arith.andi %48, %53 : vector<80x1xi1>
    %cst_22 = arith.constant 0.000000e+00 : f32
    %55 = vector.shape_cast %54 : vector<80x1xi1> to vector<80x1xi1>
    %56 = vector.broadcast %55 : vector<80x1xi1> to vector<80x128xi1>
    %57 = vector.broadcast %cst_22 : f32 to vector<80x128xf32>
    %58 = arith.select %56, %42, %57 : vector<80x128xi1>, vector<80x128xf32>
    %c0_23 = arith.constant 0 : index
    %c0_24 = arith.constant 0 : index
    %59 = vector.load %arg9[%c0_23, %c0_24] : memref<7x128xf32, #tpu.memory_space<vmem>>, vector<7x128xf32>
    %60 = vector.extract_strided_slice %58 {offsets = [8, 0], sizes = [64, 128], strides = [1, 1]} : vector<80x128xf32> to vector<64x128xf32>
    %61 = vector.extract_strided_slice %59 {offsets = [3, 0], sizes = [1, 128], strides = [1, 1]} : vector<7x128xf32> to vector<1x128xf32>
    %62 = vector.broadcast %61 : vector<1x128xf32> to vector<64x128xf32>
    %63 = arith.mulf %60, %62 : vector<64x128xf32>
    %64 = vector.extract_strided_slice %58 {offsets = [5, 0], sizes = [64, 128], strides = [1, 1]} : vector<80x128xf32> to vector<64x128xf32>
    %65 = vector.extract_strided_slice %59 {offsets = [0, 0], sizes = [1, 128], strides = [1, 1]} : vector<7x128xf32> to vector<1x128xf32>
    %66 = vector.broadcast %65 : vector<1x128xf32> to vector<64x128xf32>
    %67 = arith.mulf %64, %66 : vector<64x128xf32>
    %68 = arith.addf %63, %67 : vector<64x128xf32>
    %69 = vector.extract_strided_slice %58 {offsets = [6, 0], sizes = [64, 128], strides = [1, 1]} : vector<80x128xf32> to vector<64x128xf32>
    %70 = vector.extract_strided_slice %59 {offsets = [1, 0], sizes = [1, 128], strides = [1, 1]} : vector<7x128xf32> to vector<1x128xf32>
    %71 = vector.broadcast %70 : vector<1x128xf32> to vector<64x128xf32>
    %72 = arith.mulf %69, %71 : vector<64x128xf32>
    %73 = arith.addf %68, %72 : vector<64x128xf32>
    %74 = vector.extract_strided_slice %58 {offsets = [7, 0], sizes = [64, 128], strides = [1, 1]} : vector<80x128xf32> to vector<64x128xf32>
    %75 = vector.extract_strided_slice %59 {offsets = [2, 0], sizes = [1, 128], strides = [1, 1]} : vector<7x128xf32> to vector<1x128xf32>
    %76 = vector.broadcast %75 : vector<1x128xf32> to vector<64x128xf32>
    %77 = arith.mulf %74, %76 : vector<64x128xf32>
    %78 = arith.addf %73, %77 : vector<64x128xf32>
    %79 = vector.extract_strided_slice %58 {offsets = [9, 0], sizes = [64, 128], strides = [1, 1]} : vector<80x128xf32> to vector<64x128xf32>
    %80 = vector.extract_strided_slice %59 {offsets = [4, 0], sizes = [1, 128], strides = [1, 1]} : vector<7x128xf32> to vector<1x128xf32>
    %81 = vector.broadcast %80 : vector<1x128xf32> to vector<64x128xf32>
    %82 = arith.mulf %79, %81 : vector<64x128xf32>
    %83 = arith.addf %78, %82 : vector<64x128xf32>
    %84 = vector.extract_strided_slice %58 {offsets = [10, 0], sizes = [64, 128], strides = [1, 1]} : vector<80x128xf32> to vector<64x128xf32>
    %85 = vector.extract_strided_slice %59 {offsets = [5, 0], sizes = [1, 128], strides = [1, 1]} : vector<7x128xf32> to vector<1x128xf32>
    %86 = vector.broadcast %85 : vector<1x128xf32> to vector<64x128xf32>
    %87 = arith.mulf %84, %86 : vector<64x128xf32>
    %88 = arith.addf %83, %87 : vector<64x128xf32>
    %89 = vector.extract_strided_slice %58 {offsets = [11, 0], sizes = [64, 128], strides = [1, 1]} : vector<80x128xf32> to vector<64x128xf32>
    %90 = vector.extract_strided_slice %59 {offsets = [6, 0], sizes = [1, 128], strides = [1, 1]} : vector<7x128xf32> to vector<1x128xf32>
    %91 = vector.broadcast %90 : vector<1x128xf32> to vector<64x128xf32>
    %92 = arith.mulf %89, %91 : vector<64x128xf32>
    %93 = arith.addf %88, %92 : vector<64x128xf32>
    %94 = arith.truncf %93 : vector<64x128xf32> to vector<64x128xbf16>
    %c0_25 = arith.constant 0 : index
    %c0_26 = arith.constant 0 : index
    %c0_27 = arith.constant 0 : index
    %95 = vector.load %arg10[%c0_25, %c0_26, %c0_27] : memref<1x64x128xbf16, #tpu.memory_space<vmem>>, vector<1x64x128xbf16>
    %96 = vector.shape_cast %95 : vector<1x64x128xbf16> to vector<64x128xbf16>
    %97 = vector.shape_cast %94 : vector<64x128xbf16> to vector<1x64x128xbf16>
    tpu.vector_store %arg10[%c0_25, %c0_26, %c0_27], %97 {strides = array<i32>} : memref<1x64x128xbf16, #tpu.memory_space<vmem>>, vector<1x64x128xbf16>,
    %cst_28 = arith.constant dense<0.000000e+00> : vector<128xf32>
    %98 = vector.multi_reduction <add>, %93, %cst_28 [0] : vector<64x128xf32> to vector<128xf32>
    %99 = vector.shape_cast %98 : vector<128xf32> to vector<1x128xf32>
    %c0_29 = arith.constant 0 : index
    %c0_30 = arith.constant 0 : index
    %c0_31 = arith.constant 0 : index
    %100 = vector.load %arg11[%c0_29, %c0_30, %c0_31] : memref<1x2x128xf32, #tpu.memory_space<vmem>>, vector<1x1x128xf32>
    %101 = vector.shape_cast %100 : vector<1x1x128xf32> to vector<1x128xf32>
    %102 = vector.shape_cast %99 : vector<1x128xf32> to vector<1x1x128xf32>
    tpu.vector_store %arg11[%c0_29, %c0_30, %c0_31], %102 {strides = array<i32>} : memref<1x2x128xf32, #tpu.memory_space<vmem>>, vector<1x1x128xf32>,
    %103 = arith.mulf %93, %93 : vector<64x128xf32>
    %cst_32 = arith.constant dense<0.000000e+00> : vector<128xf32>
    %104 = vector.multi_reduction <add>, %103, %cst_32 [0] : vector<64x128xf32> to vector<128xf32>
    %105 = vector.shape_cast %104 : vector<128xf32> to vector<1x128xf32>
    %c0_33 = arith.constant 0 : index
    %c1 = arith.constant 1 : index
    %c0_34 = arith.constant 0 : index
    %106 = vector.load %arg11[%c0_33, %c1, %c0_34] : memref<1x2x128xf32, #tpu.memory_space<vmem>>, vector<1x1x128xf32>
    %107 = vector.shape_cast %106 : vector<1x1x128xf32> to vector<1x128xf32>
    %108 = vector.shape_cast %105 : vector<1x128xf32> to vector<1x1x128xf32>
    tpu.vector_store %arg11[%c0_33, %c1, %c0_34], %108 {strides = array<i32>} : memref<1x2x128xf32, #tpu.memory_space<vmem>>, vector<1x1x128xf32>,
    return
  }
  func.func @transform_0(%arg0: i32, %arg1: i32) -> (i32, i32, i32) {
    %c8_i32 = arith.constant 8 : i32
    %0 = arith.muli %arg1, %c8_i32 : i32
    %c1_i32 = arith.constant 1 : i32
    %1 = arith.subi %0, %c1_i32 : i32
    %c0_i32 = arith.constant 0 : i32
    %2 = arith.maxsi %1, %c0_i32 : i32
    %c0_i32_0 = arith.constant 0 : i32
    %c0_i32_1 = arith.constant 0 : i32
    return %arg0, %2, %c0_i32_0 : i32, i32, i32
  }
  func.func @transform_1(%arg0: i32, %arg1: i32) -> (i32, i32, i32) {
    %c0_i32 = arith.constant 0 : i32
    %c0_i32_0 = arith.constant 0 : i32
    return %arg0, %arg1, %c0_i32 : i32, i32, i32
  }
  func.func @transform_2(%arg0: i32, %arg1: i32) -> (i32, i32, i32) {
    %c1_i32 = arith.constant 1 : i32
    %0 = arith.addi %arg1, %c1_i32 : i32
    %c8_i32 = arith.constant 8 : i32
    %1 = arith.muli %0, %c8_i32 : i32
    %c31_i32 = arith.constant 31 : i32
    %2 = arith.minsi %1, %c31_i32 : i32
    %c0_i32 = arith.constant 0 : i32
    %c0_i32_0 = arith.constant 0 : i32
    return %arg0, %2, %c0_i32 : i32, i32, i32
  }
  func.func @transform_3(%arg0: i32, %arg1: i32) -> (i32, i32) {
    %c0_i32 = arith.constant 0 : i32
    %c0_i32_0 = arith.constant 0 : i32
    %c0_i32_1 = arith.constant 0 : i32
    return %c0_i32, %c0_i32_0 : i32, i32
  }
  func.func @transform_4(%arg0: i32, %arg1: i32) -> (i32, i32) {
    %c0_i32 = arith.constant 0 : i32
    %c0_i32_0 = arith.constant 0 : i32
    %c0_i32_1 = arith.constant 0 : i32
    return %c0_i32, %c0_i32_0 : i32, i32
  }
  func.func @transform_5(%arg0: i32, %arg1: i32) -> (i32, i32) {
    %c0_i32 = arith.constant 0 : i32
    %c0_i32_0 = arith.constant 0 : i32
    %c0_i32_1 = arith.constant 0 : i32
    return %c0_i32, %c0_i32_0 : i32, i32
  }
  func.func @transform_6(%arg0: i32, %arg1: i32) -> (i32, i32) {
    %c0_i32 = arith.constant 0 : i32
    %c0_i32_0 = arith.constant 0 : i32
    %c0_i32_1 = arith.constant 0 : i32
    return %c0_i32, %c0_i32_0 : i32, i32
  }
  func.func @transform_7(%arg0: i32, %arg1: i32) -> (i32, i32) {
    %c0_i32 = arith.constant 0 : i32
    %c0_i32_0 = arith.constant 0 : i32
    %c0_i32_1 = arith.constant 0 : i32
    return %c0_i32, %c0_i32_0 : i32, i32
  }
  func.func @transform_8(%arg0: i32, %arg1: i32) -> (i32, i32, i32) {
    %c0_i32 = arith.constant 0 : i32
    %c0_i32_0 = arith.constant 0 : i32
    return %arg0, %arg1, %c0_i32 : i32, i32, i32
  }
  func.func @transform_9(%arg0: i32, %arg1: i32) -> (i32, i32, i32) {
    %c4_i32 = arith.constant 4 : i32
    %0 = arith.muli %arg0, %c4_i32 : i32
    %1 = arith.addi %0, %arg1 : i32
    %c0_i32 = arith.constant 0 : i32
    %c0_i32_0 = arith.constant 0 : i32
    %c0_i32_1 = arith.constant 0 : i32
    return %1, %c0_i32, %c0_i32_0 : i32, i32, i32
  }
}

module attributes {stable_mosaic.version = 11 : i64} {
  func.func @_pass2_kernel(%arg0: i32, %arg1: memref<512x128xbf16, #tpu.memory_space<vmem>>, %arg2: memref<1x128xf32, #tpu.memory_space<vmem>>, %arg3: memref<1x128xf32, #tpu.memory_space<vmem>>, %arg4: memref<128x128xbf16, #tpu.memory_space<vmem>>, %arg5: memref<1x128xf32, #tpu.memory_space<vmem>>, %arg6: memref<512x128xf32, #tpu.memory_space<vmem>>) attributes {dimension_semantics = [#tpu.dimension_semantics<parallel>], iteration_bounds = array<i64: 1>, scalar_prefetch = 0 : i64, scratch_operands = 0 : i64, tpu.core_type = #tpu.core_type<tc>, window_params = [{transform_indices = @transform_0, window_bounds = array<i64: 512, 128>}, {pipeline_mode = #tpu.pipeline_mode<synchronous>, transform_indices = @transform_1, window_bounds = array<i64: 1, 128>}, {pipeline_mode = #tpu.pipeline_mode<synchronous>, transform_indices = @transform_2, window_bounds = array<i64: 1, 128>}, {pipeline_mode = #tpu.pipeline_mode<synchronous>, transform_indices = @transform_3, window_bounds = array<i64: 128, 128>}, {pipeline_mode = #tpu.pipeline_mode<synchronous>, transform_indices = @transform_4, window_bounds = array<i64: 1, 128>}, {transform_indices = @transform_5, window_bounds = array<i64: 512, 128>}]} {
    %c0 = arith.constant 0 : index
    %c0_0 = arith.constant 0 : index
    %0 = vector.load %arg1[%c0, %c0_0] : memref<512x128xbf16, #tpu.memory_space<vmem>>, vector<512x128xbf16>
    %1 = arith.extf %0 : vector<512x128xbf16> to vector<512x128xf32>
    %c0_1 = arith.constant 0 : index
    %c0_2 = arith.constant 0 : index
    %2 = vector.load %arg2[%c0_1, %c0_2] : memref<1x128xf32, #tpu.memory_space<vmem>>, vector<1x128xf32>
    %3 = vector.broadcast %2 : vector<1x128xf32> to vector<512x128xf32>
    %4 = arith.mulf %1, %3 : vector<512x128xf32>
    %c0_3 = arith.constant 0 : index
    %c0_4 = arith.constant 0 : index
    %5 = vector.load %arg3[%c0_3, %c0_4] : memref<1x128xf32, #tpu.memory_space<vmem>>, vector<1x128xf32>
    %6 = vector.broadcast %5 : vector<1x128xf32> to vector<512x128xf32>
    %7 = arith.addf %4, %6 : vector<512x128xf32>
    %8 = arith.negf %7 : vector<512x128xf32>
    %9 = math.exp %8 : vector<512x128xf32>
    %cst = arith.constant 1.000000e+00 : f32
    %10 = vector.broadcast %cst : f32 to vector<512x128xf32>
    %11 = arith.addf %10, %9 : vector<512x128xf32>
    %12 = arith.divf %10, %11 : vector<512x128xf32>
    %13 = arith.mulf %7, %12 : vector<512x128xf32>
    %14 = arith.truncf %13 : vector<512x128xf32> to vector<512x128xbf16>
    %c0_5 = arith.constant 0 : index
    %c0_6 = arith.constant 0 : index
    %15 = vector.load %arg4[%c0_5, %c0_6] : memref<128x128xbf16, #tpu.memory_space<vmem>>, vector<128x128xbf16>
    %cst_7 = arith.constant dense<0.000000e+00> : vector<512x128xf32>
    %16 = tpu.matmul %14, %15, %cst_7 {dimension_numbers = #tpu.dot_dimension_numbers<[1], [0], [0], [1], [0, 0, 1, 1], [], []>} : vector<512x128xbf16>, vector<128x128xbf16>, vector<512x128xf32> -> vector<512x128xf32>
    %c0_8 = arith.constant 0 : index
    %c0_9 = arith.constant 0 : index
    %17 = vector.load %arg5[%c0_8, %c0_9] : memref<1x128xf32, #tpu.memory_space<vmem>>, vector<1x128xf32>
    %18 = vector.broadcast %17 : vector<1x128xf32> to vector<512x128xf32>
    %19 = arith.addf %16, %18 : vector<512x128xf32>
    %c0_10 = arith.constant 0 : index
    %c0_11 = arith.constant 0 : index
    %20 = vector.load %arg6[%c0_10, %c0_11] : memref<512x128xf32, #tpu.memory_space<vmem>>, vector<512x128xf32>
    tpu.vector_store %arg6[%c0_10, %c0_11], %19 {strides = array<i32>} : memref<512x128xf32, #tpu.memory_space<vmem>>, vector<512x128xf32>,
    return
  }
  func.func @transform_0(%arg0: i32) -> (i32, i32) {
    %c0_i32 = arith.constant 0 : i32
    %c0_i32_0 = arith.constant 0 : i32
    return %arg0, %c0_i32 : i32, i32
  }
  func.func @transform_1(%arg0: i32) -> (i32, i32) {
    %c0_i32 = arith.constant 0 : i32
    %c0_i32_0 = arith.constant 0 : i32
    %c0_i32_1 = arith.constant 0 : i32
    return %c0_i32, %c0_i32_0 : i32, i32
  }
  func.func @transform_2(%arg0: i32) -> (i32, i32) {
    %c0_i32 = arith.constant 0 : i32
    %c0_i32_0 = arith.constant 0 : i32
    %c0_i32_1 = arith.constant 0 : i32
    return %c0_i32, %c0_i32_0 : i32, i32
  }
  func.func @transform_3(%arg0: i32) -> (i32, i32) {
    %c0_i32 = arith.constant 0 : i32
    %c0_i32_0 = arith.constant 0 : i32
    %c0_i32_1 = arith.constant 0 : i32
    return %c0_i32, %c0_i32_0 : i32, i32
  }
  func.func @transform_4(%arg0: i32) -> (i32, i32) {
    %c0_i32 = arith.constant 0 : i32
    %c0_i32_0 = arith.constant 0 : i32
    %c0_i32_1 = arith.constant 0 : i32
    return %c0_i32, %c0_i32_0 : i32, i32
  }
  func.func @transform_5(%arg0: i32) -> (i32, i32) {
    %c0_i32 = arith.constant 0 : i32
    %c0_i32_0 = arith.constant 0 : i32
    return %arg0, %c0_i32 : i32, i32
  }
}

</mosaic_0001>

<bundles_post_ra>
// kernel: conformer_conv_module.2
= control target key start
LH: loop header
LB: loop body
LE: loop exit
PB: predicated region body
PF: predicated region fallthrough
CT: control target
= control target key end

     0   :  { %s1965_s30 = smov 0   ;;  %s1967_s10 = smov 0   ;;  %s2583_s0 = inlined_call_operand.vmem [shape: f32[2,256,128], index: 0, kind: input, shape index: {}, may-alias: {0,1,2}]   ;;  %s2584_s1 = inlined_call_operand.vmem [shape: f32[2,256,128], index: 1, kind: input, shape index: {}, may-alias: {0,1,2}]   ;;  %s2585_s2 = inlined_call_operand.vmem [shape: f32[2,256,128], index: 2, kind: input, shape index: {}, may-alias: {0,1,2}]   ;;  %s2586_s3 = inlined_call_operand.vmem [shape: f32[1,128], index: 3, kind: input, shape index: {}]   ;;  %s2587_s4 = inlined_call_operand.vmem [shape: f32[1,128], index: 4, kind: input, shape index: {}]   ;;  %s2588_s5 = inlined_call_operand.vmem [shape: bf16[128,256], index: 5, kind: input, shape index: {}]   ;;  %s2589_s6 = inlined_call_operand.vmem [shape: f32[1,256], index: 6, kind: input, shape index: {}]   ;;  %s2590_s7 = inlined_call_operand.vmem [shape: f32[7,128], index: 7, kind: input, shape index: {}]   ;;  %s2591_s8 = inlined_call_operand.vmem [shape: bf16[2,256,128], index: 8, kind: output, shape index: {0}]   ;;  %s2592_s9 = inlined_call_operand.vmem [shape: f32[8,2,128], index: 9, kind: output, shape index: {1}]  }
   0x1   :  { %s1969_s11 = smov 0   ;;  %s1971_s12 = smov 0  }
   0x2   :  { %s1973_s13 = smov 0  }
   0x3 LB: > { %s29_s14 = sadd.s32 1, %s1904_s11  ;;  %s32_s15 = sadd.s32 1, %s1908_s12  ;;  %s1912_s13 = sphi %s1973_s13, %s20_s13   ;;  %s1908_s12 = sphi %s1971_s12, %s2642_s12   ;;  %s1904_s11 = sphi %s1969_s11, %s2641_s11   ;;  %s1900_s10 = sphi %s1967_s10, %s2640_s10   ;;  %s1896_s30 = sphi %s1965_s30, %s2639_s30  }
   0x4   : > { %p30_p0 = scmp.ge.s32.totalorder %s29_s14, 4  ;;  %p1632_p1 = scmp.ge.s32.totalorder %s1912_s13, 1 }
   0x5   : > { %p377_p2 = scmp.lt.s32.totalorder %s1912_s13, 9 }
   0x6   : > { %s2644_s14 = smov (%p30_p0, %s29_s14), 0  ;;  %s2646_s15 = smov (!%p30_p0, %s32_s15), %s1908_s12 }
   0x7   : > { %p378_p3 = pnand %p1632_p1, %p377_p2  ;;  %p34_p4 = scmp.ge.s32.totalorder %s2646_s15, 2 }
   0x8   : > { %s1633_s16 = sshll.u32 (!%p378_p3), %s1896_s30, 3  ;;  %p455_p5 = scmp.lt.s32.totalorder (!%p378_p3), %s1900_s10, 1 }
   0x9   : > { %s2648_s15 = smov (%p34_p4, %s2646_s15), 0  ;;  %381 = sbr.rel (%p378_p3) target bundleno = 658 (0x292), region = 52 }
   0xa   : > { %2593 = sst [smem:[#allocation2_spill]] %s2648_s15  ;;  %s1634_s17 = sadd.s32 (!%p378_p3), 4294967295, %s1633_s16 }
   0xb   : > { %p470_p6 = scmp.lt.s32.totalorder (!%p378_p3), %s1633_s16, 31  ;;  %p453_p7 = scmp.gt.s32.totalorder (!%p378_p3), %s1634_s17, 0 }
   0xc   : > { %p1635_p8 = scmp.lt.s32.totalorder (!%p378_p3), %s1634_s17, 31  ;;  %s1701_s20 = sadd.s32 (!%p378_p3), 8, %s1633_s16 }
   0xd   : > { %p2002_p9 = scmp.lt.s32.totalorder (!%p378_p3), %s1701_s20, 31  ;;  %p954_p10 = scmp.gt.s32.totalorder (!%p378_p3), %s1896_s30, 0 }
   0xe   : > { %s456_s18 = scalar_select %p455_p5, %s1900_s10, 1  ;;  %v1790_v10 = vld [vmem:[%s2588_s5 + $0x74] ss:$8 sps:$4 sm:$0xff]   ;;  %v1792_v11 = vld [vmem:[%s2588_s5 + $0x70] ss:$8 sps:$4 sm:$0xff]   ;;  %vm1067_vm1 = vcmask 1042432  }
   0xf   : > { %s2650_s17 = smov (!%p453_p7, %s1634_s17), 0  ;;  %s2654_s16 = smov (!%p470_p6, %s1633_s16), 31  ;;  %780 = vmatprep.subr.bf16.mxu0 %v1790_v10  ;;  %1733 = vmatprep.subr.bf16.mxu1 %v1790_v10  ;;  %v1793_v46 = vld [vmem:[%s2588_s5 + $0x64] ss:$8 sps:$4 sm:$0xff]   ;;  %v1795_v48 = vld [vmem:[%s2588_s5 + $0x60] ss:$8 sps:$4 sm:$0xff]  }
  0x10   : > { %s1640_s19 = sshll.u32 %s456_s18, 5  ;;  %s2652_s17 = smov (!%p1635_p8, %s2650_s17), 31  ;;  %781 = vmatpush1.bf16.msra.mxu0 %v1792_v11  ;;  %1741 = vmatpush1.bf16.msra.mxu1 %v1792_v11  ;;  %v1796_v53 = vld [vmem:[%s2588_s5 + $0x54] ss:$8 sps:$4 sm:$0xff]   ;;  %v1798_v55 = vld [vmem:[%s2588_s5 + $0x50] ss:$8 sps:$4 sm:$0xff]  }
  0x11   : > { %s460_s21 = sadd.s32 %s2652_s17, %s1640_s19  ;;  %s2006_s24 = sadd.s32 %s1640_s19, %s2654_s16  ;;  %782 = vmatprep.subr.bf16.mxu0 %v1793_v46  ;;  %1734 = vmatprep.subr.bf16.mxu1 %v1793_v46  ;;  %v1799_v56 = vld [vmem:[%s2588_s5 + $0x44] ss:$8 sps:$4 sm:$0xff]   ;;  %v1801_v57 = vld [vmem:[%s2588_s5 + $0x40] ss:$8 sps:$4 sm:$0xff]   ;;  %v1802_v58 = vld [vmem:[%s2588_s5 + $0x34] ss:$8 sps:$4 sm:$0xff]  }
  0x12   : > { %s1641_s23 = sshll.u32 %s460_s21, 3  ;;  %s1644_s28 = sshll.u32 %s2006_s24, 3  ;;  %v1804_v59 = vld [vmem:[%s2588_s5 + $0x30] ss:$8 sps:$4 sm:$0xff]   ;;  %v1805_v60 = vld [vmem:[%s2588_s5 + $0x24] ss:$8 sps:$4 sm:$0xff]  }
  0x13   : > { %s462_s27 = scalar_lea.vmem %s2583_s0, %s1641_s23  ;;  %s475_s15 = scalar_lea.vmem %s2584_s1, %s1644_s28  ;;  %v1807_v61 = vld [vmem:[%s2588_s5 + $0x20] ss:$8 sps:$4 sm:$0xff]   ;;  %v1808_v62 = vld [vmem:[%s2588_s5 + $0x14] ss:$8 sps:$4 sm:$0xff]   ;;  %v1810_v63 = vld [vmem:[%s2588_s5 + $0x10] ss:$8 sps:$4 sm:$0xff]  }
  0x14   : > { %v512_v0 = vld [vmem:[%s462_s27] sm:$0xff]  ;;  %v514_v1 = vld [vmem:[%s475_s15 + $0x8] sm:$0xff]  ;;  %s2656_s20 = smov (!%p2002_p9, %s1701_s20), 31  ;;  %v515_v3 = vld [vmem:[%s475_s15 + $0x10] sm:$0xff]  ;;  %783 = vmatpush1.bf16.msra.mxu0 %v1795_v48  ;;  %1742 = vmatpush1.bf16.msra.mxu1 %v1795_v48  ;;  %p978_p11 = scmp.lt.s32.totalorder %s1896_s30, 3  ;;  %vm1123_vm2 = vcmask 1041408  }
  0x15   : > { %522 = vadd.xlane.f32.xlu0 %v512_v0  ;;  %526 = vadd.xlane.f32.xlu1 %v514_v1  ;;  %v513_v2 = vld [vmem:[%s475_s15] sm:$0xff]  ;;  %s2658_s20 = smov (!%p2002_p9, %s2656_s20), 31  ;;  %v516_v4 = vld [vmem:[%s475_s15 + $0x18] sm:$0xff]  ;;  %v518_v6 = vld [vmem:[%s475_s15 + $0x28] sm:$0xff]  ;;  %vm1179_vm3 = vcmask 1040384   ;;  %vm1235_vm4 = vcmask 1046528  }
  0x16   : > { %s486_s16 = sadd.s32 %s1640_s19, %s2658_s20  ;;  %v517_v5 = vld [vmem:[%s475_s15 + $0x20] sm:$0xff]  ;;  %v519_v7 = vld [vmem:[%s475_s15 + $0x30] sm:$0xff]  ;;  %v520_v8 = vld [vmem:[%s475_s15 + $0x38] sm:$0xff]  ;;  %784 = vmatprep.subr.bf16.mxu0 %v1796_v53  ;;  %1735 = vmatprep.subr.bf16.mxu1 %v1796_v53  ;;  %vm1291_vm5 = vcmask 1045504   ;;  %vm1347_vm7 = vcmask 1044480   ;;  %s1653_s22 = sshll.u32 %s2006_s24, 2 }
  0x17   : > { %s1650_s17 = sshll.u32 %s486_s16, 3  ;;  %v1657_v48 = vld [vmem:[%s2587_s4] ss:$0 sm:$0xff]  ;;  %s501_s19 = scalar_lea.vmem %s2591_s8, %s1653_s22 }
  0x18   : > { %s488_s25 = scalar_lea.vmem %s2585_s2, %s1650_s17  ;;  %785 = vmatpush1.bf16.msra.mxu0 %v1798_v55  ;;  %1743 = vmatpush1.bf16.msra.mxu1 %v1798_v55  ;;  %s1654_s20 = sshll.u32 %s1900_s10, 2 }
  0x19   : > { %524 = vadd.xlane.f32.xlu0 %v513_v2  ;;  %528 = vadd.xlane.f32.xlu1 %v515_v3  ;;  %v521_v9 = vld [vmem:[%s488_s25] sm:$0xff]  ;;  %s955_s17 = scalar_select %p954_p10, 1, 0 }
  0x1a   : > { %786 = vmatprep.subr.bf16.mxu0 %v1799_v56  ;;  %1736 = vmatprep.subr.bf16.mxu1 %v1799_v56  ;;  %s2188_s25 = scalar_select %p978_p11, 1, 0 }
  0x1b   : > { %s504_s15 = sadd.s32 %s1896_s30, %s1654_s20 }
  0x1c   : > { %787 = vmatpush1.bf16.msra.mxu0 %v1801_v57  ;;  %1744 = vmatpush1.bf16.msra.mxu1 %v1801_v57  ;;  %p505_p12 = scmp.lt.s32.totalorder %s504_s15, 7 }
  0x1d   : > { %530 = vadd.xlane.f32.xlu0 %v516_v4  ;;  %532 = vadd.xlane.f32.xlu1 %v517_v5 }
  0x1e   : > { %788 = vmatprep.subr.bf16.mxu0 %v1802_v58  ;;  %1737 = vmatprep.subr.bf16.mxu1 %v1802_v58  ;;  %s2660_s15 = smov (!%p505_p12, %s504_s15), 7 }
  0x1f   : > { %s1655_s10 = sshll.u32 %s2660_s15, 1 }
  0x20   : > { %789 = vmatpush1.bf16.msra.mxu0 %v1804_v59  ;;  %1745 = vmatpush1.bf16.msra.mxu1 %v1804_v59  ;;  %s508_s28 = scalar_lea.vmem %s2592_s9, %s1655_s10 }
  0x21   : > { %534 = vadd.xlane.f32.xlu0 %v518_v6  ;;  %536 = vadd.xlane.f32.xlu1 %v519_v7 }
  0x22   : > { %790 = vmatprep.subr.bf16.mxu0 %v1805_v60  ;;  %1738 = vmatprep.subr.bf16.mxu1 %v1805_v60 }
  0x24   : > { %791 = vmatpush1.bf16.msra.mxu0 %v1807_v61  ;;  %1746 = vmatpush1.bf16.msra.mxu1 %v1807_v61 }
  0x25   : > { %538 = vadd.xlane.f32.xlu0 %v520_v8  ;;  %540 = vadd.xlane.f32.xlu1 %v521_v9 }
  0x26   : > { %792 = vmatprep.subr.bf16.mxu0 %v1808_v62  ;;  %1739 = vmatprep.subr.bf16.mxu1 %v1808_v62 }
  0x28   : > { %793 = vmatpush1.bf16.msra.mxu0 %v1810_v63  ;;  %1747 = vmatpush1.bf16.msra.mxu1 %v1810_v63 }
  0x9e   : > { %v523_v12 = vpop.xlane.xlu0 %522  ;;  %v527_v14 = vpop.xlane.xlu1 %526 }
  0x9f   : > { %v543_v13 = vmul.f32 0.0078125, %v523_v12  ;;  %v545_v15 = vmul.f32 0.0078125, %v527_v14 }
  0xa1   : > { %v2028_v16 = vsub.f32 %v512_v0, %v543_v13  ;;  %v2030_v17 = vsub.f32 %v514_v1, %v545_v15  ;;  %v1811_v0 = vld [vmem:[%s2588_s5 + $0x4] ss:$8 sps:$4 sm:$0xff]   ;;  %v1813_v1 = vld [vmem:[%s2588_s5] ss:$8 sps:$4 sm:$0xff]  }
  0xa2   : > { %v525_v18 = vpop.xlane.xlu0 %524  ;;  %v529_v21 = vpop.xlane.xlu1 %528  ;;  %794 = vmatprep.subr.bf16.mxu0 %v1811_v0  ;;  %1740 = vmatprep.subr.bf16.mxu1 %v1811_v0 }
  0xa3   : > { %v544_v19 = vmul.f32 0.0078125, %v525_v18  ;;  %v563_v20 = vmul.f32 %v2028_v16, %v2028_v16  ;;  %v546_v22 = vmul.f32 0.0078125, %v529_v21  ;;  %v565_v24 = vmul.f32 %v2030_v17, %v2030_v17  ;;  %795 = vmatpush1.bf16.msra.mxu0 %v1813_v1  ;;  %1748 = vmatpush1.bf16.msra.mxu1 %v1813_v1 }
  0xa5   : > { %v2034_v23 = vsub.f32 %v513_v2, %v544_v19  ;;  %573 = vadd.xlane.f32.xlu0 %v563_v20  ;;  %v2038_v25 = vsub.f32 %v515_v3, %v546_v22  ;;  %v1914_v2 = vmov 0  }
  0xa6   : > { %v531_v26 = vpop.xlane.xlu0 %530  ;;  %v533_v29 = vpop.xlane.xlu1 %532  ;;  %812 = vmatprep.mubr.bf16.mxu0 %v1914_v2  ;;  %842 = vmatprep.mubr.bf16.mxu1 %v1914_v2 }
  0xa7   : > { %v547_v27 = vmul.f32 0.0078125, %v531_v26  ;;  %v564_v28 = vmul.f32 %v2034_v23, %v2034_v23  ;;  %v548_v30 = vmul.f32 0.0078125, %v533_v29  ;;  %v566_v32 = vmul.f32 %v2038_v25, %v2038_v25 }
  0xa9   : > { %v2042_v31 = vsub.f32 %v516_v4, %v547_v27  ;;  %577 = vadd.xlane.f32.xlu0 %v565_v24  ;;  %575 = vadd.xlane.f32.xlu1 %v564_v28  ;;  %v2046_v33 = vsub.f32 %v517_v5, %v548_v30 }
  0xaa   : > { %v535_v34 = vpop.xlane.xlu0 %534  ;;  %v537_v37 = vpop.xlane.xlu1 %536 }
  0xab   : > { %v549_v35 = vmul.f32 0.0078125, %v535_v34  ;;  %v567_v36 = vmul.f32 %v2042_v31, %v2042_v31  ;;  %v550_v38 = vmul.f32 0.0078125, %v537_v37  ;;  %v568_v40 = vmul.f32 %v2046_v33, %v2046_v33 }
  0xad   : > { %v2050_v39 = vsub.f32 %v518_v6, %v549_v35  ;;  %579 = vadd.xlane.f32.xlu1 %v566_v32  ;;  %581 = vadd.xlane.f32.xlu0 %v567_v36  ;;  %v2054_v41 = vsub.f32 %v519_v7, %v550_v38 }
  0xae   : > { %v539_v42 = vpop.xlane.xlu0 %538  ;;  %v541_v45 = vpop.xlane.xlu1 %540 }
  0xaf   : > { %v551_v43 = vmul.f32 0.0078125, %v539_v42  ;;  %v569_v44 = vmul.f32 %v2050_v39, %v2050_v39  ;;  %v552_v47 = vmul.f32 0.0078125, %v541_v45  ;;  %v570_v50 = vmul.f32 %v2054_v41, %v2054_v41 }
  0xb1   : > { %v2064_v49 = vsub.f32 %v520_v8, %v551_v43  ;;  %583 = vadd.xlane.f32.xlu1 %v568_v40  ;;  %585 = vadd.xlane.f32.xlu0 %v569_v44  ;;  %v2068_v51 = vsub.f32 %v521_v9, %v552_v47  ;;  %v1656_v40 = vld [vmem:[%s2586_s3] ss:$0 sm:$0xff] }
  0xb3   : > { %v571_v52 = vmul.f32 %v2064_v49, %v2064_v49  ;;  %v572_v54 = vmul.f32 %v2068_v51, %v2068_v51 }
  0xb5   : > { %587 = vadd.xlane.f32.xlu1 %v570_v50  ;;  %589 = vadd.xlane.f32.xlu0 %v571_v52 }
  0xb9   : > { %591 = vadd.xlane.f32.xlu1 %v572_v54 }
 0x12e   : > { %v574_v3 = vpop.xlane.xlu0 %573 }
 0x12f   : > { %v593_v4 = vmul.f32 0.0078125, %v574_v3 }
 0x131   : > { %v603_v5 = vadd.f32 1e-05, %v593_v4 }
 0x132   : > { %v576_v6 = vpop.xlane.xlu1 %575  ;;  %v578_v7 = vpop.xlane.xlu0 %577 }
 0x133   : > { %1814 = vrsqrt.f32 %v603_v5  ;;  %v594_v8 = vmul.f32 0.0078125, %v576_v6  ;;  %v595_v9 = vmul.f32 0.0078125, %v578_v7 }
 0x135   : > { %v604_v10 = vadd.f32 1e-05, %v594_v8  ;;  %v605_v11 = vadd.f32 1e-05, %v595_v9 }
 0x136   : > { %v580_v12 = vpop.xlane.xlu1 %579  ;;  %v582_v13 = vpop.xlane.xlu0 %581 }
 0x137   : > { %1816 = vrsqrt.f32 %v604_v10  ;;  %v596_v14 = vmul.f32 0.0078125, %v580_v12  ;;  %v597_v15 = vmul.f32 0.0078125, %v582_v13 }
 0x138   : > { %1818 = vrsqrt.f32 %v605_v11 }
 0x139   : > { %v606_v18 = vadd.f32 1e-05, %v596_v14  ;;  %v607_v19 = vadd.f32 1e-05, %v597_v15 }
 0x13a   : > { %v584_v20 = vpop.xlane.xlu1 %583  ;;  %v586_v21 = vpop.xlane.xlu0 %585 }
 0x13b   : > { %1820 = vrsqrt.f32 %v606_v18  ;;  %v598_v22 = vmul.f32 0.0078125, %v584_v20  ;;  %v599_v24 = vmul.f32 0.0078125, %v586_v21  ;;  %v690_v21 = vlaneseq }
 0x13c   : > { %1822 = vrsqrt.f32 %v607_v19 }
 0x13d   : > { %v608_v26 = vadd.f32 1e-05, %v598_v22  ;;  %v609_v27 = vadd.f32 1e-05, %v599_v24  ;;  %v2137_v22 = vld [vmem:[%s2589_s6] sm:$0x3] }
 0x13e   : > { %v588_v28 = vpop.xlane.xlu1 %587  ;;  %v590_v29 = vpop.xlane.xlu0 %589 }
 0x13f   : > { %1824 = vrsqrt.f32 %v608_v26  ;;  %v600_v30 = vmul.f32 0.0078125, %v588_v28  ;;  %v601_v32 = vmul.f32 0.0078125, %v590_v29 }
 0x140   : > { %v1815_v34 = vpop.eup %1814  ;;  %1826 = vrsqrt.f32 %v609_v27 }
 0x141   : > { %v610_v35 = vadd.f32 1e-05, %v600_v30  ;;  %v611_v36 = vadd.f32 1e-05, %v601_v32  ;;  %v623_v37 = vmul.f32 %v1815_v34, %v2028_v16 }
 0x142   : > { %v592_v38 = vpop.xlane.xlu1 %591 }
 0x143   : > { %1828 = vrsqrt.f32 %v610_v35  ;;  %v602_v42 = vmul.f32 0.0078125, %v592_v38  ;;  %v640_v46 = vmul.f32 %v1656_v40, %v623_v37 }
 0x144   : > { %v1817_v43 = vpop.eup %1816  ;;  %1830 = vrsqrt.f32 %v611_v36 }
 0x145   : > { %v612_v44 = vadd.f32 1e-05, %v602_v42  ;;  %v624_v45 = vmul.f32 %v1817_v43, %v2034_v23  ;;  %v1819_v47 = vpop.eup %1818  ;;  %v657_v52 = vadd.f32 %v1657_v48, %v640_v46 }
 0x146   : > { %v625_v54 = vmul.f32 %v1819_v47, %v2030_v17 }
 0x147   : > { %1832 = vrsqrt.f32 %v612_v44  ;;  %v641_v16 = vmul.f32 %v1656_v40, %v624_v45 }
 0x148   : > { %v1821_v50 = vpop.eup %1820  ;;  %v642_v60 = vmul.f32 %v1656_v40, %v625_v54 }
 0x149   : > { %v658_v53 = vadd.f32 %v1657_v48, %v641_v16  ;;  %v626_v55 = vmul.f32 %v1821_v50, %v2038_v25  ;;  %v1823_v56 = vpop.eup %1822 }
 0x14a   : > { %v627_v1 = vmul.f32 %v1823_v56, %v2042_v31  ;;  %v659_v17 = vadd.f32 %v1657_v48, %v642_v60 }
 0x14b   : > { %v667_v57 = vpack.c.bf16 %v658_v53, %v657_v52  ;;  %v643_v58 = vmul.f32 %v1656_v40, %v626_v55 }
 0x14c   : > { %v1825_v59 = vpop.eup %1824  ;;  %v644_v9 = vmul.f32 %v1656_v40, %v627_v1 }
 0x14d   : > { %v1827_v23 = vpop.eup %1826  ;;  %813 = vmatmul.mubr.bf16.vlgmr.msra.gmra.mxu0 %v667_v57  ;;  %v660_v62 = vadd.f32 %v1657_v48, %v643_v58  ;;  %v628_v63 = vmul.f32 %v1825_v59, %v2046_v33 }
 0x14e   : > { %822 = vmatprep.mubr.bf16.mxu0 %v1914_v2  ;;  %v629_v61 = vmul.f32 %v1827_v23, %v2050_v39 }
 0x14f   : > { %v668_v5 = vpack.c.bf16 %v660_v62, %v659_v17  ;;  %v645_v7 = vmul.f32 %v1656_v40, %v628_v63 }
 0x150   : > { %v1829_v0 = vpop.eup %1828  ;;  %v646_v3 = vmul.f32 %v1656_v40, %v629_v61 }
 0x151   : > { %v630_v25 = vmul.f32 %v1829_v0, %v2054_v41  ;;  %v1831_v4 = vpop.eup %1830  ;;  %v662_v12 = vadd.f32 %v1657_v48, %v645_v7  ;;  %v661_v41 = vadd.f32 %v1657_v48, %v644_v9 }
 0x152   : > { %v663_v10 = vadd.f32 %v1657_v48, %v646_v3  ;;  %v631_v39 = vmul.f32 %v1831_v4, %v2064_v49  ;;  %v2131_v49 = vshrl.u32 %v690_v21, 7 }
 0x153   : > { %v647_v6 = vmul.f32 %v1656_v40, %v630_v25  ;;  %v669_v15 = vpack.c.bf16 %v662_v12, %v661_v41 }
 0x154   : > { %v1833_v8 = vpop.eup %1832  ;;  %v648_v14 = vmul.f32 %v1656_v40, %v631_v39  ;;  %v1159_v7 = vsub.s32 2, %v2131_v49  ;;  %v1035_v39 = vsub.s32 3, %v2131_v49  ;;  %v1271_v12 = vsub.s32 5, %v2131_v49 }
 0x155   : > { %823 = vmatmul.mubr.bf16.gmra.mxu0 %v668_v5  ;;  %v664_v11 = vadd.f32 %v1657_v48, %v647_v6  ;;  %v632_v33 = vmul.f32 %v1833_v8, %v2068_v51  ;;  %v696_v51 = vsub.s32 1, %v2131_v49  ;;  %v692_v5 = vsub.s32 0, %v2131_v49 }
 0x156   : > { %832 = vmatprep.mubr.bf16.mxu0 %v1914_v2  ;;  %v665_v19 = vadd.f32 %v1657_v48, %v648_v14 }
 0x157   : > { %v670_v31 = vpack.c.bf16 %v664_v11, %v663_v10  ;;  %v649_v13 = vmul.f32 %v1656_v40, %v632_v33  ;;  %v1032_v10 = vld [vmem:[%s2590_s7] sm:$0x7f]  ;;  %v956_v11 = vstv %s955_s17  ;;  %v1215_v33 = vsub.s32 4, %v2131_v49 }
 0x158   : > { %vm2192_vm0 = vcmp.eq.s32.totalorder %v956_v11, 1 }
 0x159   : > { %843 = vmatmul.mubr.bf16.vlgmr.msra.gmra.mxu1 %v670_v31  ;;  %v666_v18 = vadd.f32 %v1657_v48, %v649_v13  ;;  %v693_v31 = vrot.slane %v2137_v22, %v692_v5  ;;  %v1327_v13 = vsub.s32 6, %v2131_v49 }
 0x15a   : > { %852 = vmatprep.mubr.bf16.mxu1 %v1914_v2  ;;  %v2142_v2 = vrot.slane %v2137_v22, %v696_v51  ;;  %v2200_v22 = vrot.slane %v1032_v10, %v1159_v7 }
 0x15b   : > { %v671_v20 = vpack.c.bf16 %v666_v18, %v665_v19  ;;  %v2190_v18 = vrot.slane %v1032_v10, %v692_v5 }
 0x15d   : > { %833 = vmatmul.mubr.bf16.gmra.mxu0 %v669_v15 }
 0x161   : > { %853 = vmatmul.mubr.bf16.gmra.mxu1 %v671_v20  ;;  %v2198_v20 = vrot.slane %v1032_v10, %v696_v51 }
 0x20d   : > { %v2144_v24 = vpop.f32.mrf.mxu0 }
 0x20f   : > { %v816_v26 = vpop.f32.mrf.mxu0 }
 0x210   : > { %v817_v27 = vadd.f32 %v816_v26, %v2142_v2  ;;  %v2202_v26 = vrot.slane %v1032_v10, %v1035_v39 }
 0x211   : > { %v2147_v28 = vpop.f32.mrf.mxu0 }
 0x212   : > { %v1674_v29 = vmul.f32 -1.442695, %v817_v27 }
 0x213   : > { %v820_v30 = vpop.f32.mrf.mxu0 }
 0x214   : > { %1834 = vpow2.f32 %v1674_v29  ;;  %v821_v32 = vadd.f32 %v820_v30, %v2142_v2  ;;  %v815_v29 = vadd.f32 %v2144_v24, %v693_v31  ;;  %v2207_v30 = vrot.slane %v1032_v10, %v1271_v12 }
 0x215   : > { %v2150_v34 = vpop.f32.mrf.mxu0 }
 0x216   : > { %v1675_v35 = vmul.f32 -1.442695, %v821_v32  ;;  %v2209_v32 = vrot.slane %v1032_v10, %v1327_v13 }
 0x217   : > { %v826_v36 = vpop.f32.mrf.mxu0 }
 0x218   : > { %1836 = vpow2.f32 %v1675_v35  ;;  %v827_v37 = vadd.f32 %v826_v36, %v2142_v2 }
 0x219   : > { %v2153_v38 = vpop.f32.mrf.mxu0  ;;  %v2155_v40 = vpop.f32.mrf.mxu1 }
 0x21a   : > { %v1676_v42 = vmul.f32 -1.442695, %v827_v37  ;;  %v2216_v24 = vadd.f32 %v2155_v40, %v693_v31 }
 0x21b   : > { %v830_v43 = vpop.f32.mrf.mxu0  ;;  %v846_v44 = vpop.f32.mrf.mxu1 }
 0x21c   : > { %1838 = vpow2.f32 %v1676_v42  ;;  %v831_v45 = vadd.f32 %v830_v43, %v2142_v2  ;;  %v847_v46 = vadd.f32 %v846_v44, %v2142_v2  ;;  %v819_v42 = vadd.f32 %v2147_v28, %v693_v31 }
 0x21d   : > { %v2159_v47 = vpop.f32.mrf.mxu0  ;;  %v2161_v48 = vpop.f32.mrf.mxu1  ;;  %v825_v43 = vadd.f32 %v2150_v34, %v693_v31  ;;  %v829_v44 = vadd.f32 %v2153_v38, %v693_v31 }
 0x21e   : > { %v1677_v16 = vmul.f32 -1.442695, %v831_v45  ;;  %v1680_v50 = vmul.f32 -1.442695, %v847_v46  ;;  %v2219_v46 = vadd.f32 %v2159_v47, %v693_v31 }
 0x21f   : > { %v836_v52 = vpop.f32.mrf.mxu0  ;;  %v850_v53 = vpop.f32.mrf.mxu1 }
 0x220   : > { %1840 = vpow2.f32 %v1677_v16  ;;  %v837_v54 = vadd.f32 %v836_v52, %v2142_v2  ;;  %v851_v55 = vadd.f32 %v850_v53, %v2142_v2  ;;  %v2224_v52 = vadd.f32 %v2161_v48, %v693_v31 }
 0x221   : > { %v1835_v56 = vpop.eup %1834  ;;  %1842 = vpow2.f32 %v1680_v50  ;;  %v2165_v57 = vpop.f32.mrf.mxu0 }
 0x222   : > { %v2167_v58 = vpop.f32.mrf.mxu1  ;;  %v893_v59 = vadd.f32 1.0, %v1835_v56  ;;  %v1678_v23 = vmul.f32 -1.442695, %v837_v54  ;;  %v1681_v60 = vmul.f32 -1.442695, %v851_v55  ;;  %v2227_v34 = vadd.f32 %v2165_v57, %v693_v31 }
 0x223   : > { %v840_v61 = vpop.f32.mrf.mxu0  ;;  %v2235_v56 = vadd.f32 %v2167_v58, %v693_v31 }
 0x224   : > { %v856_v62 = vpop.f32.mrf.mxu1  ;;  %1844 = vrcp.f32 %v893_v59  ;;  %v841_v63 = vadd.f32 %v840_v61, %v2142_v2 }
 0x225   : > { %v857_v0 = vadd.f32 %v856_v62, %v2142_v2  ;;  %v1837_v1 = vpop.eup %1836  ;;  %1846 = vpow2.f32 %v1678_v23 }
 0x226   : > { %v894_v17 = vadd.f32 1.0, %v1837_v1  ;;  %1848 = vpow2.f32 %v1681_v60  ;;  %v1679_v25 = vmul.f32 -1.442695, %v841_v63  ;;  %v2172_v3 = vpop.f32.mrf.mxu1 }
 0x227   : > { %v1682_v4 = vmul.f32 -1.442695, %v857_v0  ;;  %v2238_v48 = vadd.f32 %v2172_v3, %v693_v31 }
 0x228   : > { %1850 = vrcp.f32 %v894_v17  ;;  %v860_v9 = vpop.f32.mrf.mxu1 }
 0x229   : > { %v1839_v6 = vpop.eup %1838  ;;  %1852 = vpow2.f32 %v1679_v25  ;;  %v861_v14 = vadd.f32 %v860_v9, %v2142_v2  ;;  %v2204_v2 = vrot.slane %v1032_v10, %v1215_v33 }
 0x22a   : > { %v895_v8 = vadd.f32 1.0, %v1839_v6  ;;  %1854 = vpow2.f32 %v1682_v4 }
 0x22b   : > { %v1683_v49 = vmul.f32 -1.442695, %v861_v14 }
 0x22c   : > { %1856 = vrcp.f32 %v895_v8 }
 0x22d   : > { %v1841_v41 = vpop.eup %1840 }
 0x22e   : > { %v1843_v15 = vpop.eup %1842  ;;  %v896_v21 = vadd.f32 1.0, %v1841_v41 }
 0x22f   : > { %v899_v27 = vadd.f32 1.0, %v1843_v15 }
 0x230   : > { %1858 = vrcp.f32 %v896_v21 }
 0x231   : > { %v1845_v35 = vpop.eup %1844  ;;  %1860 = vrcp.f32 %v899_v27 }
 0x232   : > { %v1847_v36 = vpop.eup %1846  ;;  %v923_v37 = vmul.f32 %v1845_v35, %v815_v29  ;;  %1862 = vpow2.f32 %v1683_v49 }
 0x233   : > { %v1849_v45 = vpop.eup %1848  ;;  %v897_v16 = vadd.f32 1.0, %v1847_v36 }
 0x234   : > { %v1022_v50 = vsel %vm2192_vm0, %v923_v37, 0.0  ;;  %v900_v28 = vadd.f32 1.0, %v1849_v45 }
 0x235   : > { %v1851_v38 = vpop.eup %1850  ;;  %v1049_v53 = vmul.f32 %v2190_v18, %v1022_v50  ;;  %v1105_v40 = vmul.f32 %v2198_v20, %v1022_v50  ;;  %v2232_v54 = vmul.f32 %v2200_v22, %v1022_v50  ;;  %1864 = vrcp.f32 %v897_v16 }
 0x236   : > { %v1853_v47 = vpop.eup %1852  ;;  %v924_v55 = vmul.f32 %v1851_v38, %v819_v42  ;;  %1866 = vrcp.f32 %v900_v28 }
 0x237   : > { %v1068_v57 = vrot.slane %v1049_v53, 5  ;;  %v1124_v59 = vrot.slane %v1105_v40, 6  ;;  %v898_v23 = vadd.f32 1.0, %v1853_v47  ;;  %v1855_v60 = vpop.eup %1854 }
 0x238   : > { %v1050_v62 = vmul.f32 %v2190_v18, %v924_v55  ;;  %v1106_v63 = vmul.f32 %v2198_v20, %v924_v55  ;;  %v2244_v0 = vmul.f32 %v2200_v22, %v924_v55  ;;  %v1037_v58 = vmul.f32 %v2202_v26, %v924_v55 }
 0x239   : > { %v1857_v1 = vpop.eup %1856  ;;  %v2248_v17 = vmul.f32 %v2204_v2, %v924_v55  ;;  %v2251_v25 = vmul.f32 %v2207_v30, %v924_v55  ;;  %v2254_v3 = vmul.f32 %v2209_v32, %v924_v55  ;;  %1868 = vrcp.f32 %v898_v23 }
 0x23a   : > { %v1069_v4 = vrot.slane %v1050_v62, 5  ;;  %v1125_v5 = vrot.slane %v1106_v63, 6  ;;  %v925_v6 = vmul.f32 %v1857_v1, %v825_v43  ;;  %v2263_v31 = vadd.f32 1.0, %v1855_v60 }
 0x23c   : > { %v1070_v11 = vsel %vm1067_vm1, %v1068_v57, %v1069_v4  ;;  %v1126_v39 = vsel %vm1123_vm2, %v1124_v59, %v1125_v5  ;;  %v1051_v33 = vmul.f32 %v2190_v18, %v925_v6  ;;  %v1107_v41 = vmul.f32 %v2198_v20, %v925_v6 }
 0x23d   : > { %v1859_v12 = vpop.eup %1858  ;;  %v1093_v13 = vadd.f32 %v1070_v11, %v1037_v58  ;;  %v2267_v14 = vmul.f32 %v2200_v22, %v925_v6  ;;  %v2270_v15 = vmul.f32 %v2204_v2, %v925_v6  ;;  %v2273_v21 = vmul.f32 %v2207_v30, %v925_v6 }
 0x23e   : > { %v1071_v19 = vrot.slane %v1051_v33, 5  ;;  %v2276_v27 = vmul.f32 %v2209_v32, %v925_v6  ;;  %v926_v29 = vmul.f32 %v1859_v12, %v829_v44  ;;  %v1038_v49 = vmul.f32 %v2202_v26, %v925_v6  ;;  %v1861_v42 = vpop.eup %1860 }
 0x23f   : > { %v2278_v35 = vadd.f32 %v1126_v39, %v1093_v13  ;;  %v1127_v36 = vrot.slane %v1107_v41, 6  ;;  %v2291_v40 = vpop.eup %1862  ;;  %v929_v1 = vmul.f32 %v1861_v42, %v2216_v24  ;;  %1870 = vrcp.f32 %v2263_v31 }
 0x240   : > { %v1072_v43 = vsel %vm1067_vm1, %v1069_v4, %v1071_v19  ;;  %v1039_v38 = vmul.f32 %v2202_v26, %v926_v29  ;;  %v1052_v44 = vmul.f32 %v2190_v18, %v926_v29  ;;  %v2289_v53 = vmul.f32 %v2198_v20, %v926_v29 }
 0x241   : > { %v1094_v28 = vadd.f32 %v1072_v43, %v1038_v49  ;;  %v2294_v47 = vmul.f32 %v2200_v22, %v926_v29  ;;  %v2297_v55 = vmul.f32 %v2204_v2, %v926_v29  ;;  %v2300_v57 = vmul.f32 %v2207_v30, %v926_v29 }
 0x242   : > { %v2303_v59 = vmul.f32 %v2209_v32, %v926_v29  ;;  %v1865_v23 = vpop.eup %1864  ;;  %v1128_v60 = vsel %vm1123_vm2, %v1125_v5, %v1127_v36  ;;  %v1073_v62 = vrot.slane %v1052_v44, 5  ;;  %v1129_v63 = vrot.slane %v2289_v53, 6 }
 0x243   : > { %v1867_v58 = vpop.eup %1866  ;;  %v2308_v4 = vadd.f32 %v1128_v60, %v1094_v28  ;;  %v2317_v13 = vmul.f32 %v2190_v18, %v929_v1  ;;  %v2320_v24 = vmul.f32 %v2198_v20, %v929_v1  ;;  %v2323_v29 = vmul.f32 %v2200_v22, %v929_v1 }
 0x244   : > { %v1074_v33 = vsel %vm1067_vm1, %v1071_v19, %v1073_v62  ;;  %v1130_v12 = vsel %vm1123_vm2, %v1127_v36, %v1129_v63  ;;  %v2326_v49 = vmul.f32 %v2204_v2, %v929_v1  ;;  %v1042_v19 = vmul.f32 %v2202_v26, %v929_v1 }
 0x245   : > { %v1095_v41 = vadd.f32 %v1074_v33, %v1039_v38  ;;  %v2330_v36 = vmul.f32 %v2207_v30, %v929_v1  ;;  %v2333_v43 = vmul.f32 %v2209_v32, %v929_v1  ;;  %v927_v28 = vmul.f32 %v1865_v23, %v2219_v46 }
 0x246   : > { %v1869_v42 = vpop.eup %1868  ;;  %v1079_v44 = vrot.slane %v2317_v13, 5  ;;  %v1135_v53 = vrot.slane %v2320_v24, 6  ;;  %v2357_v5 = vmul.f32 %v1867_v58, %v2224_v52  ;;  %v2601_v7 = vrot.slane %v2294_v47, 7 }
 0x247   : > { %v2336_v38 = vadd.f32 %v1130_v12, %v1095_v41  ;;  %v1053_v50 = vmul.f32 %v2190_v18, %v927_v28  ;;  %v1109_v1 = vmul.f32 %v2198_v20, %v927_v28  ;;  %v1165_v46 = vmul.f32 %v2200_v22, %v927_v28 }
 0x248   : > { %v2348_v23 = vmul.f32 %v2204_v2, %v927_v28  ;;  %v2351_v12 = vmul.f32 %v2207_v30, %v927_v28  ;;  %v2354_v39 = vmul.f32 %v2209_v32, %v927_v28  ;;  %v928_v10 = vmul.f32 %v1869_v42, %v2227_v34 }
 0x249   : > { %v1075_v41 = vrot.slane %v1053_v50, 5  ;;  %v1040_v9 = vmul.f32 %v2202_v26, %v927_v28  ;;  %v1131_v16 = vrot.slane %v1109_v1, 6  ;;  %v1187_v33 = vrot.slane %v1165_v46, 7 }
 0x24a   : > { %v1043_v51 = vmul.f32 %v2202_v26, %v2357_v5  ;;  %v1041_v52 = vmul.f32 %v2202_v26, %v928_v10  ;;  %v1054_v34 = vmul.f32 %v2190_v18, %v928_v10  ;;  %v1110_v58 = vmul.f32 %v2198_v20, %v928_v10 }
 0x24b   : > { %v1076_v8 = vsel %vm1067_vm1, %v1073_v62, %v1075_v41  ;;  %v1166_v42 = vmul.f32 %v2200_v22, %v928_v10  ;;  %v1221_v28 = vmul.f32 %v2204_v2, %v928_v10  ;;  %v2373_v62 = vmul.f32 %v2207_v30, %v928_v10 }
 0x24c   : > { %v1096_v60 = vadd.f32 %v1076_v8, %v1040_v9  ;;  %v2376_v1 = vmul.f32 %v2209_v32, %v928_v10  ;;  %v1132_v46 = vsel %vm1123_vm2, %v1129_v63, %v1131_v16  ;;  %v1077_v8 = vrot.slane %v1054_v34, 5 }
 0x24d   : > { %v1133_v9 = vrot.slane %v1110_v58, 6  ;;  %v1189_v45 = vrot.slane %v1166_v42, 7  ;;  %v1243_v11 = vrot.slane %v1221_v28, 1  ;;  %v1299_v6 = vrot.slane %v2373_v62, 2 }
 0x24e   : > { %v1152_v50 = vadd.f32 %v1132_v46, %v1096_v60  ;;  %v1078_v37 = vsel %vm1067_vm1, %v1075_v41, %v1077_v8  ;;  %v1080_v61 = vsel %vm1067_vm1, %v1077_v8, %v1079_v44  ;;  %v902_v58 = vadd.f32 1.0, %v2291_v40 }
 0x24f   : > { %v1134_v10 = vsel %vm1123_vm2, %v1131_v16, %v1133_v9  ;;  %v1097_v63 = vadd.f32 %v1078_v37, %v1041_v52  ;;  %v1098_v34 = vadd.f32 %v1080_v61, %v1042_v19  ;;  %v2390_v31 = vmul.f32 %v2190_v18, %v2357_v5 }
 0x250   : > { %v1136_v60 = vsel %vm1123_vm2, %v1133_v9, %v1135_v53  ;;  %v2397_v41 = vmul.f32 %v2198_v20, %v2357_v5  ;;  %v2401_v16 = vmul.f32 %v2200_v22, %v2357_v5  ;;  %v2597_v61 = vrot.slane %v2244_v0, 7 }
 0x251   : > { %v2598_v37 = vrot.slane %v2232_v54, 7  ;;  %v1153_v19 = vadd.f32 %v1134_v10, %v1097_v63  ;;  %1872 = vrcp.f32 %v902_v58  ;;  %v1081_v52 = vrot.slane %v2390_v31, 5 }
 0x252   : > { %v2599_v42 = vrot.slane %v2267_v14, 7  ;;  %v2600_v28 = vmov %v2597_v61  ;;  %v1154_v8 = vadd.f32 %v1136_v60, %v1098_v34  ;;  %v1137_v9 = vrot.slane %v2397_v41, 6 }
 0x253   : > { %v1182_v40 = vsel %vm1179_vm3, %v2598_v37, %v2597_v61  ;;  %v2603_v10 = vmov %v2601_v7  ;;  %v1082_v0 = vsel %vm1067_vm1, %v1079_v44, %v1081_v52  ;;  %v1190_v34 = vsel %vm1179_vm3, %v1187_v33, %v1189_v45 }
 0x254   : > { %v1184_v46 = vsel %vm1179_vm3, %v2600_v28, %v2599_v42  ;;  %v2602_v54 = vmov %v2599_v42  ;;  %v1188_v63 = vsel %vm1179_vm3, %v2603_v10, %v1187_v33  ;;  %v2604_v58 = vrot.slane %v2323_v29, 7 }
 0x255   : > { %v1186_v61 = vsel %vm1179_vm3, %v2602_v54, %v2601_v7  ;;  %v1193_v14 = vrot.slane %v2401_v16, 7  ;;  %v1099_v41 = vadd.f32 %v1082_v0, %v1043_v51  ;;  %v1138_v7 = vsel %vm1123_vm2, %v1135_v53, %v1137_v9 }
 0x256   : > { %v1192_v60 = vsel %vm1179_vm3, %v1189_v45, %v2604_v58  ;;  %v1205_v47 = vadd.f32 %v1182_v40, %v2278_v35  ;;  %v1206_v37 = vadd.f32 %v1184_v46, %v2308_v4  ;;  %v2605_v13 = vmov %v2604_v58  ;;  %v1871_v58 = vpop.eup %1870 }
 0x257   : > { %v1194_v44 = vsel %vm1179_vm3, %v2605_v13, %v1193_v14  ;;  %v1207_v33 = vadd.f32 %v1186_v61, %v2336_v38  ;;  %v1208_v42 = vadd.f32 %v1188_v63, %v1152_v50  ;;  %v1209_v28 = vadd.f32 %v1190_v34, %v1153_v19 }
 0x258   : > { %v2606_v45 = vstv %s2188_s25  ;;  %v1155_v51 = vadd.f32 %v1138_v7, %v1099_v41  ;;  %v1210_v24 = vadd.f32 %v1192_v60, %v1154_v8  ;;  %v1223_v35 = vmul.f32 %v2204_v2, %v2357_v5 }
 0x259   : > { %vm2444_vm6 = vcmp.eq.s32.totalorder %v2606_v45, 1  ;;  %v2609_v4 = vrot.slane %v2270_v15, 1  ;;  %v2610_v29 = vrot.slane %v2248_v17, 1  ;;  %v2611_v38 = vrot.slane %v2297_v55, 1 }
 0x25a   : > { %v2613_v19 = vrot.slane %v2348_v23, 1  ;;  %v2616_v17 = vrot.slane %v2326_v49, 1  ;;  %v1211_v63 = vadd.f32 %v1194_v44, %v1155_v51  ;;  %v1247_v0 = vrot.slane %v1223_v35, 1 }
 0x25b   : > { %v1238_v53 = vsel %vm1235_vm4, %v2610_v29, %v2609_v4  ;;  %v2612_v50 = vmov %v2609_v4  ;;  %v2614_v46 = vmov %v2611_v38  ;;  %v1279_v55 = vmul.f32 %v2207_v30, %v2357_v5 }
 0x25c   : > { %v1240_v40 = vsel %vm1235_vm4, %v2612_v50, %v2611_v38  ;;  %v1242_v8 = vsel %vm1235_vm4, %v2614_v46, %v2613_v19  ;;  %v2615_v54 = vmov %v2613_v19  ;;  %v1246_v10 = vsel %vm1235_vm4, %v1243_v11, %v2616_v17 }
 0x25d   : > { %v1244_v61 = vsel %vm1235_vm4, %v2615_v54, %v1243_v11  ;;  %v1261_v34 = vadd.f32 %v1238_v53, %v1205_v47  ;;  %v1262_v15 = vadd.f32 %v1240_v40, %v1206_v37  ;;  %v1263_v60 = vadd.f32 %v1242_v8, %v1207_v33 }
 0x25e   : > { %v1264_v41 = vadd.f32 %v1244_v61, %v1208_v42  ;;  %v1265_v7 = vadd.f32 %v1246_v10, %v1209_v28  ;;  %v931_v13 = vmul.f32 %v1871_v58, %v2235_v56  ;;  %v2617_v23 = vmov %v2616_v17  ;;  %v1873_v19 = vpop.eup %1872 }
 0x25f   : > { %v1248_v45 = vsel %vm1235_vm4, %v2617_v23, %v1247_v0  ;;  %v2618_v4 = vrot.slane %v2273_v21, 2  ;;  %v2619_v11 = vrot.slane %v2251_v25, 2  ;;  %v2620_v37 = vrot.slane %v2300_v57, 2 }
 0x260   : > { %v1266_v42 = vadd.f32 %v1248_v45, %v1210_v24  ;;  %v2622_v56 = vrot.slane %v2351_v12, 2  ;;  %v1303_v35 = vrot.slane %v1279_v55, 2  ;;  %v1057_v29 = vmul.f32 %v2190_v18, %v931_v13 }
 0x261   : > { %v1294_v47 = vsel %vm1291_vm5, %v2619_v11, %v2618_v4  ;;  %v2621_v44 = vmov %v2618_v4  ;;  %v2623_v49 = vmov %v2620_v37  ;;  %v1113_v21 = vmul.f32 %v2198_v20, %v931_v13 }
 0x262   : > { %v1296_v33 = vsel %vm1291_vm5, %v2621_v44, %v2620_v37  ;;  %v1298_v28 = vsel %vm1291_vm5, %v2623_v49, %v2622_v56  ;;  %v2624_v25 = vmov %v2622_v56  ;;  %v1169_v53 = vmul.f32 %v2200_v22, %v931_v13 }
 0x263   : > { %v1300_v51 = vsel %vm1291_vm5, %v2624_v25, %v1299_v6  ;;  %v2625_v24 = vrot.slane %v2330_v36, 2  ;;  %v1044_v38 = vmul.f32 %v2202_v26, %v931_v13  ;;  %v1224_v50 = vmul.f32 %v2204_v2, %v931_v13 }
 0x264   : > { %v1280_v12 = vmul.f32 %v2207_v30, %v931_v13  ;;  %v1083_v20 = vrot.slane %v1057_v29, 5  ;;  %v1139_v46 = vrot.slane %v1113_v21, 6  ;;  %v1195_v22 = vrot.slane %v1169_v53, 7 }
 0x265   : > { %v1302_v57 = vsel %vm1291_vm5, %v1299_v6, %v2625_v24  ;;  %v2626_v40 = vmov %v2625_v24  ;;  %v1317_v8 = vadd.f32 %v1294_v47, %v1261_v34  ;;  %v932_v54 = vmul.f32 %v1873_v19, %v2238_v48 }
 0x266   : > { %v1304_v18 = vsel %vm1291_vm5, %v2626_v40, %v1303_v35  ;;  %v1249_v62 = vrot.slane %v1224_v50, 1  ;;  %v1305_v61 = vrot.slane %v1280_v12, 2  ;;  %v1318_v6 = vadd.f32 %v1296_v33, %v1262_v15 }
 0x267   : > { %v1084_v26 = vsel %vm1067_vm1, %v1081_v52, %v1083_v20  ;;  %v1140_v17 = vsel %vm1123_vm2, %v1137_v9, %v1139_v46  ;;  %v1196_v36 = vsel %vm1179_vm3, %v1193_v14, %v1195_v22  ;;  %v1319_v10 = vadd.f32 %v1298_v28, %v1263_v60 }
 0x268   : > { %v1031_v58 = vsel %vm2444_vm6, %v932_v54, 0.0  ;;  %v1100_v55 = vadd.f32 %v1084_v26, %v1044_v38  ;;  %v1250_v34 = vsel %vm1235_vm4, %v1247_v0, %v1249_v62  ;;  %v1320_v23 = vadd.f32 %v1300_v51, %v1264_v41 }
 0x269   : > { %v1225_v48 = vmul.f32 %v2204_v2, %v1031_v58  ;;  %v1267_v15 = vadd.f32 %v1250_v34, %v1211_v63  ;;  %v1281_v31 = vmul.f32 %v2207_v30, %v1031_v58  ;;  %v1306_v52 = vsel %vm1291_vm5, %v1303_v35, %v1305_v61 }
 0x26a   : > { %v1156_v45 = vadd.f32 %v1140_v17, %v1100_v55  ;;  %v1321_v9 = vadd.f32 %v1302_v57, %v1265_v7  ;;  %v1335_v14 = vmul.f32 %v2209_v32, %v2357_v5  ;;  %v1336_v16 = vmul.f32 %v2209_v32, %v931_v13 }
 0x26b   : > { %v1251_v60 = vrot.slane %v1225_v48, 1  ;;  %v1307_v4 = vrot.slane %v1281_v31, 2  ;;  %v1322_v11 = vadd.f32 %v1304_v18, %v1266_v42  ;;  %v1337_v0 = vmul.f32 %v2209_v32, %v1031_v58 }
 0x26c   : > { %v1212_v41 = vadd.f32 %v1196_v36, %v1156_v45  ;;  %v1323_v2 = vadd.f32 %v1306_v52, %v1267_v15  ;;  %v2627_v63 = vrot.slane %v2276_v27, 3  ;;  %v2628_v30 = vrot.slane %v2254_v3, 3 }
 0x26d   : > { %v2629_v7 = vrot.slane %v2303_v59, 3  ;;  %v1252_v13 = vsel %vm1235_vm4, %v1249_v62, %v1251_v60  ;;  %v1308_v44 = vsel %vm1291_vm5, %v1305_v61, %v1307_v4  ;;  %v2631_v32 = vrot.slane %v2354_v39, 3 }
 0x26e   : > { %v1350_v47 = vsel %vm1347_vm7, %v2628_v30, %v2627_v63  ;;  %v2630_v37 = vmov %v2627_v63  ;;  %v2633_v3 = vrot.slane %v2376_v1, 3  ;;  %v1268_v27 = vadd.f32 %v1252_v13, %v1212_v41 }
 0x26f   : > { %v1352_v5 = vsel %vm1347_vm7, %v2630_v37, %v2629_v7  ;;  %v2632_v33 = vmov %v2629_v7  ;;  %v2634_v56 = vmov %v2631_v32  ;;  %v1359_v28 = vrot.slane %v1335_v14, 3 }
 0x270   : > { %v1354_v42 = vsel %vm1347_vm7, %v2632_v33, %v2631_v32  ;;  %v1356_v49 = vsel %vm1347_vm7, %v2634_v56, %v2633_v3  ;;  %v1361_v25 = vrot.slane %v1336_v16, 3  ;;  %v1363_v51 = vrot.slane %v1337_v0, 3 }
 0x271   : > { %v1373_v35 = vadd.f32 %v1350_v47, %v1317_v8  ;;  %v1374_v29 = vadd.f32 %v1352_v5, %v1318_v6  ;;  %v1375_v21 = vadd.f32 %v1354_v42, %v1319_v10  ;;  %v1376_v53 = vadd.f32 %v1356_v49, %v1320_v23 }
 0x272   : > { %v1324_v59 = vadd.f32 %v1308_v44, %v1268_v27  ;;  %v2635_v24 = vrot.slane %v2333_v43, 3  ;;  %v2636_v57 = vmov %v2633_v3  ;;  %v1362_v12 = vsel %vm1347_vm7, %v1359_v28, %v1361_v25 }
 0x273   : > { %v1364_v40 = vsel %vm1347_vm7, %v1361_v25, %v1363_v51  ;;  %v1713_v20 = vpack.c.bf16 %v1374_v29, %v1373_v35  ;;  %v1379_v46 = vadd.f32 %v1362_v12, %v1323_v2  ;;  %v1718_v8 = vpack.c.bf16 %v1376_v53, %v1375_v21 }
 0x274   : > { %v1358_v39 = vsel %vm1347_vm7, %v2636_v57, %v2635_v24  ;;  %v2637_v38 = vmov %v2635_v24  ;;  %v1380_v22 = vadd.f32 %v1364_v40, %v1324_v59  ;;  %v1421_v54 = vadd.f32 %v1374_v29, %v1373_v35 }
 0x275   : > { %v1360_v50 = vsel %vm1347_vm7, %v2637_v38, %v1359_v28  ;;  %v1377_v18 = vadd.f32 %v1358_v39, %v1321_v9  ;;  %1714 = vst [vmem:[%s501_s19] sm:$0xff] %v1713_v20   ;;  %v1435_v62 = vmul.f32 %v1373_v35, %v1373_v35  ;;  %v1436_v61 = vmul.f32 %v1374_v29, %v1374_v29 }
 0x276   : > { %v1378_v19 = vadd.f32 %v1360_v50, %v1322_v11  ;;  %v1437_v43 = vmul.f32 %v1375_v21, %v1375_v21  ;;  %1730 = vst [vmem:[%s501_s19 + $0x8] sm:$0xff] %v1718_v8   ;;  %v1728_v6 = vpack.c.bf16 %v1380_v22, %v1379_v46  ;;  %v1422_v26 = vadd.f32 %v1421_v54, %v1375_v21 }
 0x277   : > { %v1438_v17 = vmul.f32 %v1376_v53, %v1376_v53  ;;  %v1443_v36 = vadd.f32 %v1436_v61, %v1435_v62  ;;  %v1439_v58 = vmul.f32 %v1377_v18, %v1377_v18  ;;  %v1441_v45 = vmul.f32 %v1379_v46, %v1379_v46 }
 0x278   : > { %v1723_v1 = vpack.c.bf16 %v1378_v19, %v1377_v18  ;;  %1732 = vst [vmem:[%s501_s19 + $0x18] sm:$0xff] %v1728_v6   ;;  %v1423_v10 = vadd.f32 %v1422_v26, %v1376_v53  ;;  %v1440_v15 = vmul.f32 %v1378_v19, %v1378_v19  ;;  %v1442_v16 = vmul.f32 %v1380_v22, %v1380_v22 }
 0x279   : > { %v1444_v55 = vadd.f32 %v1443_v36, %v1437_v43 }
 0x27a   : > { %1731 = vst [vmem:[%s501_s19 + $0x10] sm:$0xff] %v1723_v1   ;;  %v1424_v34 = vadd.f32 %v1423_v10, %v1377_v18 }
 0x27b   : > { %v1445_v23 = vadd.f32 %v1444_v55, %v1438_v17 }
 0x27c   : > { %v1425_v48 = vadd.f32 %v1424_v34, %v1378_v19 }
 0x27d   : > { %v1446_v31 = vadd.f32 %v1445_v23, %v1439_v58 }
 0x27e   : > { %v1426_v52 = vadd.f32 %v1425_v48, %v1379_v46 }
 0x27f   : > { %v1447_v9 = vadd.f32 %v1446_v31, %v1440_v15 }
 0x280   : > { %v1427_v14 = vadd.f32 %v1426_v52, %v1380_v22 }
 0x281   : > { %v1448_v60 = vadd.f32 %v1447_v9, %v1441_v45 }
 0x282   : > { %v1428_v4 = vrot.slane %v1427_v14, 4 }
 0x283   : > { %v1449_v11 = vadd.f32 %v1448_v60, %v1442_v16 }
 0x284   : > { %v1429_v0 = vadd.f32 %v1428_v4, %v1427_v14 }
 0x285   : > { %v1450_v41 = vrot.slane %v1449_v11, 4 }
 0x286   : > { %v1430_v2 = vrot.slane %v1429_v0, 2 }
 0x287   : > { %v1451_v63 = vadd.f32 %v1450_v41, %v1449_v11 }
 0x288   : > { %v1431_v30 = vadd.f32 %v1430_v2, %v1429_v0 }
 0x289   : > { %v1452_v47 = vrot.slane %v1451_v63, 2 }
 0x28a   : > { %v1432_v7 = vrot.slane %v1431_v30, 1 }
 0x28b   : > { %v1453_v37 = vadd.f32 %v1452_v47, %v1451_v63 }
 0x28c   : > { %v1433_v5 = vadd.f32 %v1432_v7, %v1431_v30 }
 0x28d   : > { %v1454_v13 = vrot.slane %v1453_v37, 1 }
 0x28e   : > { %1434 = vst [vmem:[%s508_s28] sm:$0x1] %v1433_v5 }
 0x28f   : > { %v1455_v44 = vadd.f32 %v1454_v13, %v1453_v37 }
 0x291   : > { %1456 = vst [vmem:[%s508_s28 + $0x1] sm:$0x1] %v1455_v44 }
 0x292 PF: > { %s20_s13 = sadd.s32 1, %s1912_s13   ;;  %s2638_s29 = sld [smem:[#allocation2_spill]] }
 0x293   : > { %p17_p13 = scmp.ge.s32.totalorder %s20_s13, 10   ;;  %s2639_s30 = smov %s1904_s11 }
 0x294   : > { %s2640_s10 = smov %s1908_s12  ;;  %s2641_s11 = smov %s2644_s14 }
 0x295   :  { %19 = sbr.rel (!%p17_p13) target bundleno = 3 (0x3), region = 100 }
 0x298   : > { %s2642_s12 = smov %s2638_s29 }

// kernel: conformer_conv_module.3
= control target key start
LH: loop header
LB: loop body
LE: loop exit
PB: predicated region body
PF: predicated region fallthrough
CT: control target
= control target key end

     0   :  { %s2565_s0 = inlined_call_operand.vmem [shape: bf16[512,128], index: 0, kind: input, shape index: {}]   ;;  %s2566_s1 = inlined_call_operand.vmem [shape: f32[1,128], index: 1, kind: input, shape index: {}]   ;;  %s2567_s2 = inlined_call_operand.vmem [shape: f32[1,128], index: 2, kind: input, shape index: {}]   ;;  %s2568_s3 = inlined_call_operand.vmem [shape: bf16[128,128], index: 3, kind: input, shape index: {}]   ;;  %s2569_s4 = inlined_call_operand.vmem [shape: f32[1,128], index: 4, kind: input, shape index: {}]   ;;  %s2570_s5 = inlined_call_operand.hbm [shape: f32[512,128], index: 5, kind: output, shape index: {}]  }
   0x1   :  { %v1585_v0 = vld [vmem:[%s2568_s3 + $0x38] sm:$0xff]   ;;  %v1586_v1 = vld [vmem:[%s2568_s3 + $0x30] sm:$0xff]   ;;  %v1587_v2 = vld [vmem:[%s2568_s3 + $0x28] sm:$0xff]  }
   0x2   :  { %1486 = vmatprep.subr.bf16.mxu0 %v1585_v0  ;;  %1566 = vmatprep.subr.bf16.mxu1 %v1585_v0  ;;  %v1588_v3 = vld [vmem:[%s2568_s3 + $0x20] sm:$0xff]   ;;  %v1415_v9 = vld [vmem:[%s2565_s0 + $0x8] sm:$0xff]   ;;  %v1416_v16 = vld [vmem:[%s2565_s0 + $0x10] sm:$0xff]  }
   0x3   :  { %1487 = vmatpush3.bf16.msra.mxu0 %v1585_v0  ;;  %1574 = vmatpush3.bf16.msra.mxu1 %v1585_v0  ;;  %v1288_v4 = vld [vmem:[%s2565_s0] sm:$0xff]   ;;  %v1431_v10 = vld [vmem:[%s2565_s0 + $0x88] sm:$0xff]   ;;  %v1293_v14 = vunpack.c.l.bf16 %v1415_v9  ;;  %v1294_v15 = vunpack.c.h.bf16 %v1415_v9  ;;  %v1589_v21 = vld [vmem:[%s2568_s3 + $0x18] sm:$0xff]   ;;  %v1297_v25 = vunpack.c.l.bf16 %v1416_v16  ;;  %v1298_v47 = vunpack.c.h.bf16 %v1416_v16 }
   0x4   :  { %1488 = vmatprep.subr.bf16.mxu0 %v1586_v1  ;;  %1567 = vmatprep.subr.bf16.mxu1 %v1586_v1  ;;  %v1924_v5 = vld [vmem:[%s2566_s1] ss:$0 sm:$0xff]  ;;  %v1289_v6 = vunpack.c.l.bf16 %v1288_v4  ;;  %v1290_v7 = vunpack.c.h.bf16 %v1288_v4  ;;  %v1357_v19 = vunpack.c.l.bf16 %v1431_v10  ;;  %v1358_v20 = vunpack.c.h.bf16 %v1431_v10  ;;  %v1590_v30 = vld [vmem:[%s2568_s3 + $0x10] sm:$0xff]   ;;  %v1417_v40 = vld [vmem:[%s2565_s0 + $0x18] sm:$0xff]  }
   0x5   :  { %v1430_v8 = vld [vmem:[%s2565_s0 + $0x80] sm:$0xff]   ;;  %v159_v24 = vmul.f32 %v1293_v14, %v1924_v5  ;;  %v160_v28 = vmul.f32 %v1294_v15, %v1924_v5  ;;  %v1432_v39 = vld [vmem:[%s2565_s0 + $0x90] sm:$0xff]   ;;  %v161_v49 = vmul.f32 %v1297_v25, %v1924_v5  ;;  %v162_v51 = vmul.f32 %v1298_v47, %v1924_v5  ;;  %v1591_v54 = vld [vmem:[%s2568_s3 + $0x8] sm:$0xff]  }
   0x6   :  { %v1938_v11 = vld [vmem:[%s2567_s2] ss:$0 sm:$0xff]  ;;  %v1353_v12 = vunpack.c.l.bf16 %v1430_v8  ;;  %v1354_v13 = vunpack.c.h.bf16 %v1430_v8  ;;  %v157_v17 = vmul.f32 %v1289_v6, %v1924_v5  ;;  %v158_v18 = vmul.f32 %v1290_v7, %v1924_v5  ;;  %v1433_v61 = vld [vmem:[%s2565_s0 + $0x98] sm:$0xff]  }
   0x7   :  { %1489 = vmatpush3.bf16.msra.mxu0 %v1586_v1  ;;  %1575 = vmatpush3.bf16.msra.mxu1 %v1586_v1  ;;  %v191_v29 = vmul.f32 %v1357_v19, %v1924_v5  ;;  %v1969_v33 = vadd.f32 %v1938_v11, %v159_v24  ;;  %v192_v34 = vmul.f32 %v1358_v20, %v1924_v5  ;;  %v1361_v50 = vunpack.c.l.bf16 %v1432_v39 }
   0x8   :  { %1490 = vmatprep.subr.bf16.mxu0 %v1587_v2  ;;  %1568 = vmatprep.subr.bf16.mxu1 %v1587_v2  ;;  %v189_v22 = vmul.f32 %v1353_v12, %v1924_v5  ;;  %v190_v23 = vmul.f32 %v1354_v13, %v1924_v5  ;;  %v1952_v26 = vadd.f32 %v1938_v11, %v157_v17  ;;  %v1362_v52 = vunpack.c.h.bf16 %v1432_v39 }
   0x9   :  { %v1955_v27 = vadd.f32 %v1938_v11, %v158_v18  ;;  %v1975_v37 = vadd.f32 %v1938_v11, %v160_v28  ;;  %v1978_v38 = vadd.f32 %v1938_v11, %v191_v29  ;;  %v1216_v43 = vmul.f32 -1.442695, %v1969_v33 }
   0xa   :  { %v1963_v31 = vadd.f32 %v1938_v11, %v189_v22  ;;  %v1966_v32 = vadd.f32 %v1938_v11, %v190_v23  ;;  %v1214_v35 = vmul.f32 -1.442695, %v1952_v26  ;;  %v1990_v44 = vadd.f32 %v1938_v11, %v192_v34 }
   0xb   :  { %1491 = vmatpush3.bf16.msra.mxu0 %v1587_v2  ;;  %1576 = vmatpush3.bf16.msra.mxu1 %v1587_v2  ;;  %v1215_v36 = vmul.f32 -1.442695, %v1955_v27  ;;  %v1217_v45 = vmul.f32 -1.442695, %v1975_v37  ;;  %v1248_v46 = vmul.f32 -1.442695, %v1978_v38  ;;  %v1301_v53 = vunpack.c.l.bf16 %v1417_v40 }
   0xc   :  { %1492 = vmatprep.subr.bf16.mxu0 %v1588_v3  ;;  %1569 = vmatprep.subr.bf16.mxu1 %v1588_v3  ;;  %v1246_v41 = vmul.f32 -1.442695, %v1963_v31  ;;  %v1247_v42 = vmul.f32 -1.442695, %v1966_v32  ;;  %1593 = vpow2.f32 %v1214_v35  ;;  %v1249_v48 = vmul.f32 -1.442695, %v1990_v44 }
   0xd   :  { %1595 = vpow2.f32 %v1215_v36  ;;  %v2001_v55 = vadd.f32 %v1938_v11, %v161_v49  ;;  %v193_v56 = vmul.f32 %v1361_v50, %v1924_v5  ;;  %v1302_v57 = vunpack.c.h.bf16 %v1417_v40 }
   0xe   :  { %1597 = vpow2.f32 %v1246_v41  ;;  %v2005_v58 = vadd.f32 %v1938_v11, %v162_v51  ;;  %v194_v59 = vmul.f32 %v1362_v52, %v1924_v5  ;;  %v163_v60 = vmul.f32 %v1301_v53, %v1924_v5 }
   0xf   :  { %1493 = vmatpush3.bf16.msra.mxu0 %v1588_v3  ;;  %1577 = vmatpush3.bf16.msra.mxu1 %v1588_v3  ;;  %1599 = vpow2.f32 %v1247_v42 }
  0x10   :  { %1494 = vmatprep.subr.bf16.mxu0 %v1589_v21  ;;  %1570 = vmatprep.subr.bf16.mxu1 %v1589_v21  ;;  %1601 = vpow2.f32 %v1216_v43 }
  0x13   :  { %1495 = vmatpush3.bf16.msra.mxu0 %v1589_v21  ;;  %1578 = vmatpush3.bf16.msra.mxu1 %v1589_v21 }
  0x14   :  { %1496 = vmatprep.subr.bf16.mxu0 %v1590_v30  ;;  %1571 = vmatprep.subr.bf16.mxu1 %v1590_v30 }
  0x15   :  { %10 = vsyncpa [#allocation3], 0  ;;  %1603 = vpow2.f32 %v1217_v45  ;;  %v1218_v62 = vmul.f32 -1.442695, %v2001_v55  ;;  %v2014_v63 = vadd.f32 %v1938_v11, %v193_v56  ;;  %v164_v0 = vmul.f32 %v1302_v57, %v1924_v5  ;;  %v1418_v4 = vld [vmem:[%s2565_s0 + $0x20] sm:$0xff]   ;;  %v1419_v43 = vld [vmem:[%s2565_s0 + $0x28] sm:$0xff]  }
  0x16   :  { %1605 = vpow2.f32 %v1248_v46  ;;  %v1219_v1 = vmul.f32 -1.442695, %v2005_v58  ;;  %v2019_v2 = vadd.f32 %v1938_v11, %v194_v59  ;;  %v2022_v3 = vadd.f32 %v1938_v11, %v163_v60  ;;  %v1592_v6 = vld [vmem:[%s2568_s3] sm:$0xff]   ;;  %v1435_v49 = vld [vmem:[%s2565_s0 + $0xa8] sm:$0xff]  }
  0x17   :  { %1497 = vmatpush3.bf16.msra.mxu0 %v1590_v30  ;;  %1579 = vmatpush3.bf16.msra.mxu1 %v1590_v30  ;;  %1607 = vpow2.f32 %v1249_v48  ;;  %v1250_v7 = vmul.f32 -1.442695, %v2014_v63  ;;  %v2032_v8 = vadd.f32 %v1938_v11, %v164_v0  ;;  %v1365_v9 = vunpack.c.l.bf16 %v1433_v61  ;;  %v1434_v10 = vld [vmem:[%s2565_s0 + $0xa0] sm:$0xff]  }
  0x18   :  { %1498 = vmatprep.subr.bf16.mxu0 %v1591_v54  ;;  %1572 = vmatprep.subr.bf16.mxu1 %v1591_v54  ;;  %1609 = vpow2.f32 %v1218_v62  ;;  %v1251_v12 = vmul.f32 -1.442695, %v2019_v2  ;;  %v1220_v13 = vmul.f32 -1.442695, %v2022_v3  ;;  %v1366_v14 = vunpack.c.h.bf16 %v1433_v61 }
  0x19   :  { %1611 = vpow2.f32 %v1219_v1  ;;  %v1221_v15 = vmul.f32 -1.442695, %v2032_v8  ;;  %v195_v16 = vmul.f32 %v1365_v9, %v1924_v5  ;;  %v1305_v17 = vunpack.c.l.bf16 %v1418_v4  ;;  %v1594_v29 = vpop.eup %1593 }
  0x1a   :  { %1613 = vpow2.f32 %v1250_v7  ;;  %v196_v18 = vmul.f32 %v1366_v14, %v1924_v5  ;;  %v1306_v19 = vunpack.c.h.bf16 %v1418_v4  ;;  %v1369_v20 = vunpack.c.l.bf16 %v1434_v10  ;;  %v1596_v36 = vpop.eup %1595 }
  0x1b   :  { %1499 = vmatpush3.bf16.msra.mxu0 %v1591_v54  ;;  %1580 = vmatpush3.bf16.msra.mxu1 %v1591_v54  ;;  %1615 = vpow2.f32 %v1251_v12  ;;  %v2043_v21 = vadd.f32 %v1938_v11, %v195_v16  ;;  %v165_v22 = vmul.f32 %v1305_v17, %v1924_v5  ;;  %v1370_v23 = vunpack.c.h.bf16 %v1434_v10  ;;  %v1598_v45 = vpop.eup %1597 }
  0x1c   :  { %1500 = vmatprep.subr.bf16.mxu0 %v1592_v6  ;;  %1573 = vmatprep.subr.bf16.mxu1 %v1592_v6  ;;  %1617 = vpow2.f32 %v1220_v13  ;;  %v2047_v24 = vadd.f32 %v1938_v11, %v196_v18  ;;  %v166_v25 = vmul.f32 %v1306_v19, %v1924_v5  ;;  %v197_v28 = vmul.f32 %v1369_v20, %v1924_v5  ;;  %v1600_v50 = vpop.eup %1599 }
  0x1d   :  { %1619 = vpow2.f32 %v1221_v15  ;;  %v1252_v30 = vmul.f32 -1.442695, %v2043_v21  ;;  %v2053_v34 = vadd.f32 %v1938_v11, %v165_v22  ;;  %v198_v35 = vmul.f32 %v1370_v23, %v1924_v5  ;;  %v1602_v54 = vpop.eup %1601  ;;  %v1420_v23 = vld [vmem:[%s2565_s0 + $0x30] sm:$0xff]  }
  0x1e   :  { %v484_v39 = vadd.f32 1.0, %v1594_v29  ;;  %v2057_v40 = vmul.f32 -1.442695, %v2047_v24  ;;  %v2060_v41 = vadd.f32 %v1938_v11, %v166_v25  ;;  %v2063_v42 = vadd.f32 %v1938_v11, %v197_v28 }
  0x1f   :  { %1501 = vmatpush3.bf16.msra.mxu0 %v1592_v6  ;;  %1581 = vmatpush3.bf16.msra.mxu1 %v1592_v6  ;;  %v485_v46 = vadd.f32 1.0, %v1596_v36  ;;  %1621 = vpow2.f32 %v1252_v30  ;;  %v2069_v47 = vmul.f32 -1.442695, %v2053_v34  ;;  %v2072_v48 = vadd.f32 %v1938_v11, %v198_v35  ;;  %v1436_v35 = vld [vmem:[%s2565_s0 + $0xb0] sm:$0xff]  }
  0x20   :  { %1623 = vrcp.f32 %v484_v39  ;;  %v516_v51 = vadd.f32 1.0, %v1598_v45  ;;  %v2078_v52 = vmul.f32 -1.442695, %v2060_v41  ;;  %v2081_v53 = vmul.f32 -1.442695, %v2063_v42 }
  0x21   :  { %1625 = vrcp.f32 %v485_v46  ;;  %v517_v56 = vadd.f32 1.0, %v1600_v50  ;;  %v2084_v57 = vmul.f32 -1.442695, %v2072_v48  ;;  %v1309_v59 = vunpack.c.l.bf16 %v1419_v43 }
  0x22   :  { %v1604_v60 = vpop.eup %1603  ;;  %1627 = vrcp.f32 %v516_v51  ;;  %v486_v61 = vadd.f32 1.0, %v1602_v54  ;;  %v1310_v62 = vunpack.c.h.bf16 %v1419_v43  ;;  %v1373_v0 = vunpack.c.l.bf16 %v1435_v49  ;;  %v1421_v54 = vld [vmem:[%s2565_s0 + $0x38] sm:$0xff]  }
  0x23   :  { %v1606_v1 = vpop.eup %1605  ;;  %1629 = vrcp.f32 %v517_v56  ;;  %v487_v4 = vadd.f32 1.0, %v1604_v60  ;;  %v167_v6 = vmul.f32 %v1309_v59, %v1924_v5  ;;  %v1374_v7 = vunpack.c.h.bf16 %v1435_v49 }
  0x24   :  { %v1608_v9 = vpop.eup %1607  ;;  %1631 = vrcp.f32 %v486_v61  ;;  %v518_v10 = vadd.f32 1.0, %v1606_v1  ;;  %v168_v12 = vmul.f32 %v1310_v62, %v1924_v5  ;;  %v199_v13 = vmul.f32 %v1373_v0, %v1924_v5 }
  0x25   :  { %v1610_v14 = vpop.eup %1609  ;;  %1633 = vrcp.f32 %v487_v4  ;;  %v519_v15 = vadd.f32 1.0, %v1608_v9  ;;  %v2090_v16 = vadd.f32 %v1938_v11, %v167_v6  ;;  %v200_v17 = vmul.f32 %v1374_v7, %v1924_v5 }
  0x26   :  { %v1612_v18 = vpop.eup %1611  ;;  %1635 = vrcp.f32 %v518_v10  ;;  %v488_v19 = vadd.f32 1.0, %v1610_v14  ;;  %v2094_v20 = vadd.f32 %v1938_v11, %v168_v12  ;;  %v2097_v22 = vadd.f32 %v1938_v11, %v199_v13 }
  0x27   :  { %v1614_v25 = vpop.eup %1613  ;;  %1637 = vrcp.f32 %v519_v15  ;;  %v489_v28 = vadd.f32 1.0, %v1612_v18  ;;  %v2103_v29 = vmul.f32 -1.442695, %v2090_v16  ;;  %v2106_v30 = vadd.f32 %v1938_v11, %v200_v17 }
  0x28   :  { %v1616_v36 = vpop.eup %1615  ;;  %1639 = vrcp.f32 %v488_v19  ;;  %v520_v39 = vadd.f32 1.0, %v1614_v25  ;;  %v2112_v43 = vmul.f32 -1.442695, %v2094_v20  ;;  %v2115_v45 = vmul.f32 -1.442695, %v2097_v22 }
  0x29   :  { %v1618_v46 = vpop.eup %1617  ;;  %1641 = vrcp.f32 %v489_v28  ;;  %v521_v49 = vadd.f32 1.0, %v1616_v36  ;;  %v2118_v50 = vmul.f32 -1.442695, %v2106_v30  ;;  %v1313_v51 = vunpack.c.l.bf16 %v1420_v23 }
  0x2a   :  { %v1620_v56 = vpop.eup %1619  ;;  %1643 = vrcp.f32 %v520_v39  ;;  %v490_v59 = vadd.f32 1.0, %v1618_v46  ;;  %v1314_v60 = vunpack.c.h.bf16 %v1420_v23  ;;  %v1377_v61 = vunpack.c.l.bf16 %v1436_v35  ;;  %v1437_v46 = vld [vmem:[%s2565_s0 + $0xb8] sm:$0xff]  }
  0x2b   :  { %1645 = vrcp.f32 %v521_v49  ;;  %v491_v62 = vadd.f32 1.0, %v1620_v56  ;;  %v169_v0 = vmul.f32 %v1313_v51, %v1924_v5  ;;  %v1378_v1 = vunpack.c.h.bf16 %v1436_v35 }
  0x2c   :  { %v1622_v4 = vpop.eup %1621  ;;  %1647 = vrcp.f32 %v490_v59  ;;  %v170_v6 = vmul.f32 %v1314_v60, %v1924_v5  ;;  %v201_v7 = vmul.f32 %v1377_v61, %v1924_v5  ;;  %v1317_v9 = vunpack.c.l.bf16 %v1421_v54 }
  0x2d   :  { %v1624_v10 = vpop.eup %1623  ;;  %1649 = vrcp.f32 %v491_v62  ;;  %v522_v12 = vadd.f32 1.0, %v1622_v4  ;;  %v2127_v13 = vadd.f32 %v1938_v11, %v169_v0  ;;  %v202_v14 = vmul.f32 %v1378_v1, %v1924_v5 }
  0x2e   :  { %v1626_v15 = vpop.eup %1625  ;;  %v676_v17 = vmul.f32 %v1624_v10, %v1952_v26  ;;  %1651 = vpow2.f32 %v2057_v40  ;;  %v2133_v18 = vadd.f32 %v1938_v11, %v170_v6  ;;  %v2136_v19 = vadd.f32 %v1938_v11, %v201_v7 }
  0x2f   :  { %v1628_v23 = vpop.eup %1627  ;;  %v677_v25 = vmul.f32 %v1626_v15, %v1955_v27  ;;  %1653 = vrcp.f32 %v522_v12  ;;  %v1226_v28 = vmul.f32 -1.442695, %v2127_v13  ;;  %v2141_v35 = vadd.f32 %v1938_v11, %v202_v14 }
  0x30   :  { %v1630_v36 = vpop.eup %1629  ;;  %v708_v26 = vmul.f32 %v1628_v23, %v1963_v31  ;;  %1655 = vpow2.f32 %v2069_v47  ;;  %v1227_v40 = vmul.f32 -1.442695, %v2133_v18  ;;  %v1258_v39 = vmul.f32 -1.442695, %v2136_v19 }
  0x31   :  { %v1632_v27 = vpop.eup %1631  ;;  %v740_v49 = vpack.c.bf16 %v677_v25, %v676_v17  ;;  %v709_v51 = vmul.f32 %v1630_v36, %v1966_v32  ;;  %1657 = vpow2.f32 %v2078_v52  ;;  %v1259_v56 = vmul.f32 -1.442695, %v2141_v35 }
  0x32   :  { %v1634_v59 = vpop.eup %1633  ;;  %v678_v31 = vmul.f32 %v1632_v27, %v1969_v33  ;;  %1659 = vpow2.f32 %v2081_v53  ;;  %v1318_v47 = vunpack.c.h.bf16 %v1421_v54  ;;  %v171_v60 = vmul.f32 %v1317_v9, %v1924_v5 }
  0x33   :  { %v1636_v61 = vpop.eup %1635  ;;  %1502 = vmatprep.mubr.bf16.mxu0 %v740_v49  ;;  %v756_v62 = vpack.c.bf16 %v709_v51, %v708_v26  ;;  %v679_v0 = vmul.f32 %v1634_v59, %v1975_v37  ;;  %1661 = vpow2.f32 %v2084_v57  ;;  %v1381_v32 = vunpack.c.l.bf16 %v1437_v46 }
  0x34   :  { %v1638_v1 = vpop.eup %1637  ;;  %v710_v52 = vmul.f32 %v1636_v61, %v1978_v38  ;;  %1663 = vpow2.f32 %v2103_v29  ;;  %v172_v33 = vmul.f32 %v1318_v47, %v1924_v5  ;;  %v2162_v53 = vadd.f32 %v1938_v11, %v171_v60 }
  0x35   :  { %v1640_v54 = vpop.eup %1639  ;;  %1534 = vmatprep.mubr.bf16.mxu1 %v756_v62  ;;  %v741_v4 = vpack.c.bf16 %v679_v0, %v678_v31  ;;  %v711_v6 = vmul.f32 %v1638_v1, %v1990_v44  ;;  %1665 = vpow2.f32 %v2112_v43  ;;  %v1382_v37 = vunpack.c.h.bf16 %v1437_v46 }
  0x36   :  { %v1642_v57 = vpop.eup %1641  ;;  %v680_v7 = vmul.f32 %v1640_v54, %v2001_v55  ;;  %1667 = vpow2.f32 %v2115_v45  ;;  %v2169_v38 = vadd.f32 %v1938_v11, %v172_v33  ;;  %v1228_v29 = vmul.f32 -1.442695, %v2162_v53  ;;  %v1422_v55 = vld [vmem:[%s2565_s0 + $0x40] sm:$0xff]  }
  0x37   :  { %v1644_v9 = vpop.eup %1643  ;;  %1503 = vmatmul.mubr.bf16.vlgmr.msra.gmra.mxu0 %v741_v4  ;;  %v757_v10 = vpack.c.bf16 %v711_v6, %v710_v52  ;;  %v681_v12 = vmul.f32 %v1642_v57, %v2005_v58  ;;  %1669 = vpow2.f32 %v2118_v50  ;;  %v203_v44 = vmul.f32 %v1381_v32, %v1924_v5  ;;  %v1423_v6 = vld [vmem:[%s2565_s0 + $0x48] sm:$0xff]  }
  0x38   :  { %v1646_v43 = vpop.eup %1645  ;;  %v712_v45 = vmul.f32 %v1644_v9, %v2014_v63  ;;  %1671 = vpow2.f32 %v1226_v28  ;;  %v1229_v14 = vmul.f32 -1.442695, %v2169_v38  ;;  %v204_v15 = vmul.f32 %v1382_v37, %v1924_v5 }
  0x39   :  { %v1648_v17 = vpop.eup %1647  ;;  %1535 = vmatmul.mubr.bf16.vlgmr.msra.gmra.mxu1 %v757_v10  ;;  %v742_v23 = vpack.c.bf16 %v681_v12, %v680_v7  ;;  %v713_v58 = vmul.f32 %v1646_v43, %v2019_v2  ;;  %1673 = vpow2.f32 %v1227_v40  ;;  %v2183_v50 = vadd.f32 %v1938_v11, %v203_v44  ;;  %v1438_v40 = vld [vmem:[%s2565_s0 + $0xc0] sm:$0xff]  }
  0x3a   :  { %v1650_v25 = vpop.eup %1649  ;;  %v682_v36 = vmul.f32 %v1648_v17, %v2022_v3  ;;  %1675 = vpow2.f32 %v1258_v39  ;;  %v2187_v63 = vadd.f32 %v1938_v11, %v204_v15  ;;  %v1321_v28 = vunpack.c.l.bf16 %v1422_v55  ;;  %v1439_v15 = vld [vmem:[%s2565_s0 + $0xc8] sm:$0xff]  }
  0x3b   :  { %v1652_v26 = vpop.eup %1651  ;;  %1506 = vmatprep.mubr.bf16.mxu0 %v742_v23  ;;  %v758_v46 = vpack.c.bf16 %v713_v58, %v712_v45  ;;  %v683_v27 = vmul.f32 %v1650_v25, %v2032_v8  ;;  %1677 = vpow2.f32 %v1259_v56  ;;  %v1260_v2 = vmul.f32 -1.442695, %v2183_v50 }
  0x3c   :  { %v1654_v49 = vpop.eup %1653  ;;  %v523_v51 = vadd.f32 1.0, %v1652_v26  ;;  %1679 = vpow2.f32 %v1228_v29  ;;  %v2195_v3 = vmul.f32 -1.442695, %v2187_v63  ;;  %v1322_v39 = vunpack.c.h.bf16 %v1422_v55 }
  0x3d   :  { %v1656_v59 = vpop.eup %1655  ;;  %1538 = vmatprep.mubr.bf16.mxu1 %v758_v46  ;;  %v743_v31 = vpack.c.bf16 %v683_v27, %v682_v36  ;;  %v2198_v47 = vmul.f32 %v1654_v49, %v2043_v21  ;;  %1681 = vpow2.f32 %v1229_v14  ;;  %v173_v8 = vmul.f32 %v1321_v28, %v1924_v5 }
  0x3e   :  { %v1658_v56 = vpop.eup %1657  ;;  %1683 = vrcp.f32 %v523_v51  ;;  %v492_v60 = vadd.f32 1.0, %v1656_v59  ;;  %v174_v61 = vmul.f32 %v1322_v39, %v1924_v5  ;;  %v1385_v62 = vunpack.c.l.bf16 %v1438_v40 }
  0x3f   :  { %v1660_v0 = vpop.eup %1659  ;;  %1507 = vmatmul.mubr.bf16.gmra.mxu0 %v743_v31  ;;  %v493_v32 = vadd.f32 1.0, %v1658_v56  ;;  %1685 = vpow2.f32 %v1260_v2  ;;  %v2203_v1 = vadd.f32 %v1938_v11, %v173_v8  ;;  %v1386_v52 = vunpack.c.h.bf16 %v1438_v40 }
  0x40   :  { %v1662_v33 = vpop.eup %1661  ;;  %1687 = vrcp.f32 %v492_v60  ;;  %v524_v21 = vadd.f32 1.0, %v1660_v0  ;;  %v2206_v54 = vadd.f32 %v1938_v11, %v174_v61  ;;  %v205_v4 = vmul.f32 %v1385_v62, %v1924_v5  ;;  %v1424_v62 = vld [vmem:[%s2565_s0 + $0x50] sm:$0xff]  }
  0x41   :  { %v1664_v37 = vpop.eup %1663  ;;  %1689 = vrcp.f32 %v493_v32  ;;  %v525_v57 = vadd.f32 1.0, %v1662_v33  ;;  %v2213_v7 = vmul.f32 -1.442695, %v2203_v1  ;;  %v206_v29 = vmul.f32 %v1386_v52, %v1924_v5 }
  0x42   :  { %v1666_v9 = vpop.eup %1665  ;;  %1691 = vrcp.f32 %v524_v21  ;;  %v494_v10 = vadd.f32 1.0, %v1664_v37  ;;  %v2217_v12 = vmul.f32 -1.442695, %v2206_v54  ;;  %v2220_v44 = vadd.f32 %v1938_v11, %v205_v4 }
  0x43   :  { %v1668_v55 = vpop.eup %1667  ;;  %1693 = vrcp.f32 %v525_v57  ;;  %v495_v43 = vadd.f32 1.0, %v1666_v9  ;;  %v2223_v45 = vadd.f32 %v1938_v11, %v206_v29  ;;  %v1325_v14 = vunpack.c.l.bf16 %v1423_v6 }
  0x44   :  { %v1670_v17 = vpop.eup %1669  ;;  %1695 = vrcp.f32 %v494_v10  ;;  %v526_v23 = vadd.f32 1.0, %v1668_v55  ;;  %v2229_v58 = vmul.f32 -1.442695, %v2220_v44  ;;  %v1326_v25 = vunpack.c.h.bf16 %v1423_v6 }
  0x45   :  { %v1672_v36 = vpop.eup %1671  ;;  %1697 = vrcp.f32 %v495_v43  ;;  %v527_v28 = vadd.f32 1.0, %v1670_v17  ;;  %v2232_v26 = vmul.f32 -1.442695, %v2223_v45  ;;  %v175_v46 = vmul.f32 %v1325_v14, %v1924_v5  ;;  %v1440_v17 = vld [vmem:[%s2565_s0 + $0xd0] sm:$0xff]  }
  0x46   :  { %v1674_v27 = vpop.eup %1673  ;;  %1699 = vrcp.f32 %v526_v23  ;;  %v496_v2 = vadd.f32 1.0, %v1672_v36  ;;  %v176_v40 = vmul.f32 %v1326_v25, %v1924_v5  ;;  %v1389_v49 = vunpack.c.l.bf16 %v1439_v15 }
  0x47   :  { %v1676_v51 = vpop.eup %1675  ;;  %1701 = vrcp.f32 %v527_v28  ;;  %v497_v39 = vadd.f32 1.0, %v1674_v27  ;;  %v2237_v59 = vadd.f32 %v1938_v11, %v175_v46  ;;  %v1390_v31 = vunpack.c.h.bf16 %v1439_v15 }
  0x48   :  { %v1678_v8 = vpop.eup %1677  ;;  %1703 = vrcp.f32 %v496_v2  ;;  %v528_v56 = vadd.f32 1.0, %v1676_v51  ;;  %v2240_v60 = vadd.f32 %v1938_v11, %v176_v40  ;;  %v207_v61 = vmul.f32 %v1389_v49, %v1924_v5 }
  0x49   :  { %v1680_v0 = vpop.eup %1679  ;;  %1705 = vrcp.f32 %v497_v39  ;;  %v529_v32 = vadd.f32 1.0, %v1678_v8  ;;  %v1232_v52 = vmul.f32 -1.442695, %v2237_v59  ;;  %v208_v33 = vmul.f32 %v1390_v31, %v1924_v5 }
  0x4a   :  { %v1682_v21 = vpop.eup %1681  ;;  %1707 = vrcp.f32 %v528_v56  ;;  %v498_v4 = vadd.f32 1.0, %v1680_v0  ;;  %v1233_v6 = vmul.f32 -1.442695, %v2240_v60  ;;  %v2250_v37 = vadd.f32 %v1938_v11, %v207_v61 }
  0x4b   :  { %v1684_v57 = vpop.eup %1683  ;;  %1709 = vrcp.f32 %v529_v32  ;;  %v499_v29 = vadd.f32 1.0, %v1682_v21  ;;  %v2253_v9 = vadd.f32 %v1938_v11, %v208_v33  ;;  %v1329_v10 = vunpack.c.l.bf16 %v1424_v62 }
  0x4c   :  { %v1686_v55 = vpop.eup %1685  ;;  %v715_v43 = vmul.f32 %v1684_v57, %v2047_v24  ;;  %1711 = vrcp.f32 %v498_v4  ;;  %v1264_v14 = vmul.f32 -1.442695, %v2250_v37  ;;  %v1330_v15 = vunpack.c.h.bf16 %v1424_v62  ;;  %v1425_v62 = vld [vmem:[%s2565_s0 + $0x58] sm:$0xff]  }
  0x4d   :  { %v1688_v23 = vpop.eup %1687  ;;  %1713 = vrcp.f32 %v499_v29  ;;  %v530_v25 = vadd.f32 1.0, %v1686_v55  ;;  %v1265_v36 = vmul.f32 -1.442695, %v2253_v9  ;;  %v177_v28 = vmul.f32 %v1329_v10, %v1924_v5 }
  0x4e   :  { %v1690_v46 = vpop.eup %1689  ;;  %v759_v27 = vpack.c.bf16 %v715_v43, %v2198_v47  ;;  %v684_v24 = vmul.f32 %v1688_v23, %v2053_v34  ;;  %1715 = vpow2.f32 %v2195_v3  ;;  %v178_v2 = vmul.f32 %v1330_v15, %v1924_v5  ;;  %v1441_v15 = vld [vmem:[%s2565_s0 + $0xd8] sm:$0xff]  }
  0x4f   :  { %v1692_v40 = vpop.eup %1691  ;;  %v685_v49 = vmul.f32 %v1690_v46, %v2060_v41  ;;  %1717 = vrcp.f32 %v530_v25  ;;  %v2268_v51 = vadd.f32 %v1938_v11, %v177_v28  ;;  %v1393_v39 = vunpack.c.l.bf16 %v1440_v17 }
  0x50   :  { %v1694_v31 = vpop.eup %1693  ;;  %1539 = vmatmul.mubr.bf16.gmra.mxu1 %v759_v27  ;;  %v716_v8 = vmul.f32 %v1692_v40, %v2063_v42  ;;  %1719 = vpow2.f32 %v2213_v7  ;;  %v2273_v34 = vadd.f32 %v1938_v11, %v178_v2  ;;  %v1394_v3 = vunpack.c.h.bf16 %v1440_v17 }
  0x51   :  { %v1696_v47 = vpop.eup %1695  ;;  %v744_v56 = vpack.c.bf16 %v685_v49, %v684_v24  ;;  %v717_v61 = vmul.f32 %v1694_v31, %v2072_v48  ;;  %1721 = vpow2.f32 %v2217_v12  ;;  %v1234_v41 = vmul.f32 -1.442695, %v2268_v51  ;;  %v1426_v49 = vld [vmem:[%s2565_s0 + $0x60] sm:$0xff]  }
  0x52   :  { %v1698_v0 = vpop.eup %1697  ;;  %v686_v42 = vmul.f32 %v1696_v47, %v2090_v16  ;;  %1723 = vpow2.f32 %v2229_v58  ;;  %v1235_v7 = vmul.f32 -1.442695, %v2273_v34  ;;  %v209_v32 = vmul.f32 %v1393_v39, %v1924_v5 }
  0x53   :  { %v1700_v33 = vpop.eup %1699  ;;  %1510 = vmatprep.mubr.bf16.mxu0 %v744_v56  ;;  %v760_v48 = vpack.c.bf16 %v717_v61, %v716_v8  ;;  %v687_v12 = vmul.f32 %v1698_v0, %v2094_v20  ;;  %1725 = vpow2.f32 %v2232_v26  ;;  %v210_v21 = vmul.f32 %v1394_v3, %v1924_v5 }
  0x54   :  { %v1702_v4 = vpop.eup %1701  ;;  %v718_v57 = vmul.f32 %v1700_v33, %v2097_v22  ;;  %1727 = vpow2.f32 %v1232_v52  ;;  %v2290_v16 = vadd.f32 %v1938_v11, %v209_v32  ;;  %v1333_v58 = vunpack.c.l.bf16 %v1425_v62 }
  0x55   :  { %v1704_v29 = vpop.eup %1703  ;;  %1542 = vmatprep.mubr.bf16.mxu1 %v760_v48  ;;  %v745_v10 = vpack.c.bf16 %v687_v12, %v686_v42  ;;  %v719_v55 = vmul.f32 %v1702_v4, %v2106_v30  ;;  %1729 = vpow2.f32 %v1233_v6  ;;  %v2294_v20 = vadd.f32 %v1938_v11, %v210_v21 }
  0x56   :  { %v1706_v26 = vpop.eup %1705  ;;  %v688_v43 = vmul.f32 %v1704_v29, %v2127_v13  ;;  %1731 = vpow2.f32 %v1264_v14  ;;  %v1266_v22 = vmul.f32 -1.442695, %v2290_v16  ;;  %v1334_v52 = vunpack.c.h.bf16 %v1425_v62 }
  0x57   :  { %v1708_v17 = vpop.eup %1707  ;;  %1511 = vmatmul.mubr.bf16.gmra.mxu0 %v745_v10  ;;  %v761_v23 = vpack.c.bf16 %v719_v55, %v718_v57  ;;  %v689_v30 = vmul.f32 %v1706_v26, %v2133_v18  ;;  %1733 = vpow2.f32 %v1265_v36  ;;  %v1267_v6 = vmul.f32 -1.442695, %v2294_v20  ;;  %v1442_v57 = vld [vmem:[%s2565_s0 + $0xe0] sm:$0xff]  }
  0x58   :  { %v1710_v25 = vpop.eup %1709  ;;  %v720_v28 = vmul.f32 %v1708_v17, %v2136_v19  ;;  %1735 = vpow2.f32 %v1234_v41  ;;  %v179_v13 = vmul.f32 %v1333_v58, %v1924_v5  ;;  %v180_v14 = vmul.f32 %v1334_v52, %v1924_v5 }
  0x59   :  { %v1712_v46 = vpop.eup %1711  ;;  %1543 = vmatmul.mubr.bf16.gmra.mxu1 %v761_v23  ;;  %v746_v27 = vpack.c.bf16 %v689_v30, %v688_v43  ;;  %v721_v24 = vmul.f32 %v1710_v25, %v2141_v35  ;;  %1737 = vpow2.f32 %v1235_v7  ;;  %v1397_v2 = vunpack.c.l.bf16 %v1441_v15 }
  0x5a   :  { %v1714_v40 = vpop.eup %1713  ;;  %v690_v18 = vmul.f32 %v1712_v46, %v2162_v53  ;;  %1739 = vpow2.f32 %v1266_v22  ;;  %v2309_v36 = vadd.f32 %v1938_v11, %v179_v13  ;;  %v2312_v19 = vadd.f32 %v1938_v11, %v180_v14 }
  0x5b   :  { %v1716_v39 = vpop.eup %1715  ;;  %1514 = vmatprep.mubr.bf16.mxu0 %v746_v27  ;;  %v762_v31 = vpack.c.bf16 %v721_v24, %v720_v28  ;;  %v691_v35 = vmul.f32 %v1714_v40, %v2169_v38  ;;  %1741 = vpow2.f32 %v1267_v6  ;;  %v1398_v8 = vunpack.c.h.bf16 %v1441_v15  ;;  %v1427_v6 = vld [vmem:[%s2565_s0 + $0x68] sm:$0xff]  }
  0x5c   :  { %v1718_v3 = vpop.eup %1717  ;;  %v531_v53 = vadd.f32 1.0, %v1716_v39  ;;  %v1236_v47 = vmul.f32 -1.442695, %v2309_v36  ;;  %v2320_v56 = vmul.f32 -1.442695, %v2312_v19  ;;  %v211_v61 = vmul.f32 %v1397_v2, %v1924_v5 }
  0x5d   :  { %v1720_v41 = vpop.eup %1719  ;;  %1546 = vmatprep.mubr.bf16.mxu1 %v762_v31  ;;  %v747_v62 = vpack.c.bf16 %v691_v35, %v690_v18  ;;  %v2324_v0 = vmul.f32 %v1718_v3, %v2183_v50  ;;  %v212_v42 = vmul.f32 %v1398_v8, %v1924_v5  ;;  %v1337_v38 = vunpack.c.l.bf16 %v1426_v49  ;;  %v2363_v18 = vld [vmem:[%s2566_s1] ss:$0 sm:$0xff] }
  0x5e   :  { %v1722_v7 = vpop.eup %1721  ;;  %1743 = vrcp.f32 %v531_v53  ;;  %v500_v32 = vadd.f32 1.0, %v1720_v41  ;;  %v2328_v33 = vadd.f32 %v1938_v11, %v211_v61  ;;  %v1338_v48 = vunpack.c.h.bf16 %v1426_v49  ;;  %v2369_v8 = vld [vmem:[%s2567_s2] ss:$0 sm:$0xff] }
  0x5f   :  { %v1724_v12 = vpop.eup %1723  ;;  %1515 = vmatmul.mubr.bf16.gmra.mxu0 %v747_v62  ;;  %v501_v21 = vadd.f32 1.0, %v1722_v7  ;;  %1745 = vpow2.f32 %v1236_v47  ;;  %v2331_v4 = vadd.f32 %v1938_v11, %v212_v42  ;;  %v181_v50 = vmul.f32 %v1337_v38, %v1924_v5  ;;  %v1443_v62 = vld [vmem:[%s2565_s0 + $0xe8] sm:$0xff]  }
  0x60   :  { %v1726_v58 = vpop.eup %1725  ;;  %1747 = vrcp.f32 %v500_v32  ;;  %v532_v29 = vadd.f32 1.0, %v1724_v12  ;;  %v2338_v10 = vmul.f32 -1.442695, %v2328_v33  ;;  %v182_v55 = vmul.f32 %v1338_v48, %v1924_v5  ;;  %v1428_v48 = vld [vmem:[%s2565_s0 + $0x70] sm:$0xff]  }
  0x61   :  { %v1728_v26 = vpop.eup %1727  ;;  %1749 = vrcp.f32 %v501_v21  ;;  %v533_v43 = vadd.f32 1.0, %v1726_v58  ;;  %v2342_v22 = vmul.f32 -1.442695, %v2331_v4  ;;  %v2345_v52 = vadd.f32 %v1938_v11, %v181_v50 }
  0x62   :  { %v1730_v15 = vpop.eup %1729  ;;  %1751 = vrcp.f32 %v532_v29  ;;  %v502_v17 = vadd.f32 1.0, %v1728_v26  ;;  %v2348_v23 = vadd.f32 %v1938_v11, %v182_v55  ;;  %v1401_v30 = vunpack.c.l.bf16 %v1442_v57 }
  0x63   :  { %v1732_v25 = vpop.eup %1731  ;;  %1753 = vrcp.f32 %v533_v43  ;;  %v503_v28 = vadd.f32 1.0, %v1730_v15  ;;  %v2354_v13 = vmul.f32 -1.442695, %v2345_v52  ;;  %v1402_v14 = vunpack.c.h.bf16 %v1442_v57 }
  0x64   :  { %v1734_v46 = vpop.eup %1733  ;;  %1755 = vrcp.f32 %v502_v17  ;;  %v534_v27 = vadd.f32 1.0, %v1732_v25  ;;  %v2357_v24 = vmul.f32 -1.442695, %v2348_v23  ;;  %v213_v11 = vmul.f32 %v1401_v30, %v1924_v5 }
  0x65   :  { %v1736_v2 = vpop.eup %1735  ;;  %1757 = vrcp.f32 %v503_v28  ;;  %v535_v40 = vadd.f32 1.0, %v1734_v46  ;;  %v214_v49 = vmul.f32 %v2363_v18, %v1402_v14  ;;  %v1341_v39 = vunpack.c.l.bf16 %v1427_v6 }
  0x66   :  { %v1738_v31 = vpop.eup %1737  ;;  %1759 = vrcp.f32 %v534_v27  ;;  %v504_v35 = vadd.f32 1.0, %v1736_v2  ;;  %v2372_v5 = vadd.f32 %v2369_v8, %v213_v11  ;;  %v1342_v3 = vunpack.c.h.bf16 %v1427_v6 }
  0x67   :  { %v1740_v53 = vpop.eup %1739  ;;  %1761 = vrcp.f32 %v535_v40  ;;  %v505_v47 = vadd.f32 1.0, %v1738_v31  ;;  %v2375_v61 = vadd.f32 %v2369_v8, %v214_v49  ;;  %v183_v41 = vmul.f32 %v2363_v18, %v1341_v39 }
  0x68   :  { %v1742_v42 = vpop.eup %1741  ;;  %1763 = vrcp.f32 %v504_v35  ;;  %v536_v38 = vadd.f32 1.0, %v1740_v53  ;;  %v1270_v7 = vmul.f32 -1.442695, %v2372_v5  ;;  %v184_v32 = vmul.f32 %v2363_v18, %v1342_v3 }
  0x69   :  { %1765 = vrcp.f32 %v505_v47  ;;  %v537_v12 = vadd.f32 1.0, %v1742_v42  ;;  %v1271_v21 = vmul.f32 -1.442695, %v2375_v61  ;;  %v2388_v50 = vadd.f32 %v2369_v8, %v183_v41 }
  0x6a   :  { %1767 = vrcp.f32 %v536_v38  ;;  %v2391_v57 = vadd.f32 %v2369_v8, %v184_v32  ;;  %v1405_v58 = vunpack.c.l.bf16 %v1443_v62  ;;  %v1406_v29 = vunpack.c.h.bf16 %v1443_v62 }
  0x6b   :  { %v1744_v55 = vpop.eup %1743  ;;  %1769 = vrcp.f32 %v537_v12  ;;  %v1240_v26 = vmul.f32 -1.442695, %v2388_v50  ;;  %v1345_v43 = vunpack.c.l.bf16 %v1428_v48  ;;  %v1346_v15 = vunpack.c.h.bf16 %v1428_v48 }
  0x6c   :  { %v1746_v17 = vpop.eup %1745  ;;  %v723_v30 = vmul.f32 %v1744_v55, %v2187_v63  ;;  %1771 = vpow2.f32 %v2320_v56  ;;  %v1241_v6 = vmul.f32 -1.442695, %v2391_v57  ;;  %v215_v25 = vmul.f32 %v2363_v18, %v1405_v58 }
  0x6d   :  { %v1748_v28 = vpop.eup %1747  ;;  %v506_v14 = vadd.f32 1.0, %v1746_v17  ;;  %1773 = vpow2.f32 %v2338_v10  ;;  %v216_v46 = vmul.f32 %v2363_v18, %v1406_v29  ;;  %v185_v27 = vmul.f32 %v2363_v18, %v1345_v43 }
  0x6e   :  { %v1750_v11 = vpop.eup %1749  ;;  %v763_v2 = vpack.c.bf16 %v723_v30, %v2324_v0  ;;  %v692_v40 = vmul.f32 %v1748_v28, %v2203_v1  ;;  %1775 = vpow2.f32 %v2342_v22  ;;  %v2405_v63 = vadd.f32 %v2369_v8, %v215_v25 }
  0x6f   :  { %v1752_v56 = vpop.eup %1751  ;;  %v693_v49 = vmul.f32 %v1750_v11, %v2206_v54  ;;  %1777 = vrcp.f32 %v506_v14  ;;  %v2409_v10 = vadd.f32 %v2369_v8, %v216_v46  ;;  %v186_v39 = vmul.f32 %v2363_v18, %v1346_v15  ;;  %v1444_v54 = vld [vmem:[%s2565_s0 + $0xf0] sm:$0xff]  }
  0x70   :  { %v1754_v31 = vpop.eup %1753  ;;  %1547 = vmatmul.mubr.bf16.gmra.mxu1 %v763_v2  ;;  %v724_v0 = vmul.f32 %v1752_v56, %v2220_v44  ;;  %1779 = vpow2.f32 %v2354_v13  ;;  %v1272_v1 = vmul.f32 -1.442695, %v2405_v63  ;;  %v2416_v22 = vadd.f32 %v2369_v8, %v185_v27  ;;  %v1445_v2 = vld [vmem:[%s2565_s0 + $0xf8] sm:$0xff]  }
  0x71   :  { %v1756_v35 = vpop.eup %1755  ;;  %v748_v3 = vpack.c.bf16 %v693_v49, %v692_v40  ;;  %v725_v53 = vmul.f32 %v1754_v31, %v2223_v45  ;;  %1781 = vpow2.f32 %v2357_v24  ;;  %v1273_v47 = vmul.f32 -1.442695, %v2409_v10 }
  0x72   :  { %v1758_v44 = vpop.eup %1757  ;;  %v694_v13 = vmul.f32 %v1756_v35, %v2237_v59  ;;  %1783 = vpow2.f32 %v1270_v7  ;;  %v2426_v41 = vadd.f32 %v2369_v8, %v186_v39  ;;  %v1242_v62 = vmul.f32 -1.442695, %v2416_v22 }
  0x73   :  { %v1760_v42 = vpop.eup %1759  ;;  %1518 = vmatprep.mubr.bf16.mxu0 %v748_v3  ;;  %v764_v38 = vpack.c.bf16 %v725_v53, %v724_v0  ;;  %v695_v32 = vmul.f32 %v1758_v44, %v2240_v60  ;;  %1785 = vpow2.f32 %v1271_v21  ;;  %v1409_v45 = vunpack.c.l.bf16 %v1444_v54 }
  0x74   :  { %v1762_v48 = vpop.eup %1761  ;;  %v726_v24 = vmul.f32 %v1760_v42, %v2250_v37  ;;  %1787 = vpow2.f32 %v1240_v26  ;;  %v1243_v12 = vmul.f32 -1.442695, %v2426_v41  ;;  %v1410_v59 = vunpack.c.h.bf16 %v1444_v54 }
  0x75   :  { %v1764_v7 = vpop.eup %1763  ;;  %1550 = vmatprep.mubr.bf16.mxu1 %v764_v38  ;;  %v749_v58 = vpack.c.bf16 %v695_v32, %v694_v13  ;;  %v727_v29 = vmul.f32 %v1762_v48, %v2253_v9  ;;  %1789 = vpow2.f32 %v1241_v6  ;;  %v217_v55 = vmul.f32 %v2363_v18, %v1409_v45  ;;  %v1429_v9 = vld [vmem:[%s2565_s0 + $0x78] sm:$0xff]  }
  0x76   :  { %v1766_v43 = vpop.eup %1765  ;;  %v696_v60 = vmul.f32 %v1764_v7, %v2268_v51  ;;  %1791 = vpow2.f32 %v1272_v1  ;;  %v218_v21 = vmul.f32 %v2363_v18, %v1410_v59  ;;  %v1349_v11 = vunpack.c.l.bf16 %v1429_v9 }
  0x77   :  { %v1768_v15 = vpop.eup %1767  ;;  %1519 = vmatmul.mubr.bf16.gmra.mxu0 %v749_v58  ;;  %v765_v37 = vpack.c.bf16 %v727_v29, %v726_v24  ;;  %v697_v26 = vmul.f32 %v1766_v43, %v2273_v34  ;;  %1793 = vpow2.f32 %v1273_v47  ;;  %v2438_v17 = vadd.f32 %v2369_v8, %v217_v55 }
  0x78   :  { %v1770_v30 = vpop.eup %1769  ;;  %v728_v6 = vmul.f32 %v1768_v15, %v2290_v16  ;;  %1795 = vpow2.f32 %v1242_v62  ;;  %v2445_v51 = vadd.f32 %v2369_v8, %v218_v21  ;;  %v1350_v31 = vunpack.c.h.bf16 %v1429_v9 }
  0x79   :  { %v1772_v25 = vpop.eup %1771  ;;  %1551 = vmatmul.mubr.bf16.gmra.mxu1 %v765_v37  ;;  %v750_v28 = vpack.c.bf16 %v697_v26, %v696_v60  ;;  %v729_v34 = vmul.f32 %v1770_v30, %v2294_v20  ;;  %1797 = vpow2.f32 %v1243_v12  ;;  %v1274_v14 = vmul.f32 -1.442695, %v2438_v17 }
  0x7a   :  { %v1774_v46 = vpop.eup %1773  ;;  %v507_v27 = vadd.f32 1.0, %v1772_v25  ;;  %v1275_v49 = vmul.f32 -1.442695, %v2445_v51  ;;  %v1413_v1 = vunpack.c.l.bf16 %v1445_v2  ;;  %v187_v3 = vmul.f32 %v2363_v18, %v1349_v11 }
  0x7b   :  { %v1776_v16 = vpop.eup %1775  ;;  %1522 = vmatprep.mubr.bf16.mxu0 %v750_v28  ;;  %v766_v40 = vpack.c.bf16 %v729_v34, %v728_v6  ;;  %v538_v56 = vadd.f32 1.0, %v1774_v46  ;;  %1799 = vpow2.f32 %v1274_v14  ;;  %v1414_v53 = vunpack.c.h.bf16 %v1445_v2 }
  0x7c   :  { %v1778_v39 = vpop.eup %1777  ;;  %1801 = vrcp.f32 %v507_v27  ;;  %v539_v20 = vadd.f32 1.0, %v1776_v16  ;;  %v188_v42 = vmul.f32 %v2363_v18, %v1350_v31  ;;  %v219_v45 = vmul.f32 %v2363_v18, %v1413_v1 }
  0x7d   :  { %v1780_v0 = vpop.eup %1779  ;;  %1554 = vmatprep.mubr.bf16.mxu1 %v766_v40  ;;  %1803 = vrcp.f32 %v538_v56  ;;  %v2457_v12 = vadd.f32 %v2369_v8, %v187_v3  ;;  %v220_v59 = vmul.f32 %v2363_v18, %v1414_v53  ;;  %v698_v25 = vmul.f32 %v1778_v39, %v2309_v36 }
  0x7e   :  { %v1782_v54 = vpop.eup %1781  ;;  %1805 = vrcp.f32 %v539_v20  ;;  %v508_v35 = vadd.f32 1.0, %v1780_v0  ;;  %v2461_v43 = vadd.f32 %v2369_v8, %v188_v42  ;;  %v2464_v15 = vadd.f32 %v2369_v8, %v219_v45 }
  0x7f   :  { %v1784_v47 = vpop.eup %1783  ;;  %v509_v44 = vadd.f32 1.0, %v1782_v54  ;;  %1807 = vpow2.f32 %v1275_v49  ;;  %v1244_v18 = vmul.f32 -1.442695, %v2457_v12  ;;  %v2468_v9 = vadd.f32 %v2369_v8, %v220_v59 }
  0x80   :  { %v1786_v13 = vpop.eup %1785  ;;  %1809 = vrcp.f32 %v508_v35  ;;  %v540_v62 = vadd.f32 1.0, %v1784_v47  ;;  %v1245_v28 = vmul.f32 -1.442695, %v2461_v43  ;;  %v1276_v46 = vmul.f32 -1.442695, %v2464_v15 }
  0x81   :  { %v1788_v38 = vpop.eup %1787  ;;  %1811 = vrcp.f32 %v509_v44  ;;  %v541_v32 = vadd.f32 1.0, %v1786_v13  ;;  %v1277_v8 = vmul.f32 -1.442695, %v2468_v9 }
  0x82   :  { %v1790_v48 = vpop.eup %1789  ;;  %1813 = vrcp.f32 %v540_v62  ;;  %v510_v24 = vadd.f32 1.0, %v1788_v38 }
  0x83   :  { %v1792_v7 = vpop.eup %1791  ;;  %1815 = vrcp.f32 %v541_v32  ;;  %v511_v58 = vadd.f32 1.0, %v1790_v48 }
  0x84   :  { %v1794_v29 = vpop.eup %1793  ;;  %1817 = vrcp.f32 %v510_v24  ;;  %v542_v55 = vadd.f32 1.0, %v1792_v7 }
  0x85   :  { %v1796_v60 = vpop.eup %1795  ;;  %1819 = vrcp.f32 %v511_v58  ;;  %v543_v21 = vadd.f32 1.0, %v1794_v29 }
  0x86   :  { %v1798_v37 = vpop.eup %1797  ;;  %1821 = vrcp.f32 %v542_v55  ;;  %v512_v26 = vadd.f32 1.0, %v1796_v60 }
  0x87   :  { %1823 = vrcp.f32 %v543_v21  ;;  %v513_v30 = vadd.f32 1.0, %v1798_v37 }
  0x88   :  { %v1800_v6 = vpop.eup %1799  ;;  %1825 = vrcp.f32 %v512_v26 }
  0x89   :  { %v1802_v34 = vpop.eup %1801  ;;  %1827 = vrcp.f32 %v513_v30  ;;  %v544_v14 = vadd.f32 1.0, %v1800_v6 }
  0x8a   :  { %v1804_v27 = vpop.eup %1803  ;;  %v699_v11 = vmul.f32 %v1802_v34, %v2312_v19  ;;  %1829 = vpow2.f32 %v1244_v18 }
  0x8b   :  { %v1806_v2 = vpop.eup %1805  ;;  %v730_v16 = vmul.f32 %v1804_v27, %v2328_v33  ;;  %1831 = vrcp.f32 %v544_v14 }
  0x8c   :  { %v1808_v40 = vpop.eup %1807  ;;  %v751_v36 = vpack.c.bf16 %v699_v11, %v698_v25  ;;  %v731_v56 = vmul.f32 %v1806_v2, %v2331_v4  ;;  %1833 = vpow2.f32 %v1245_v28 }
  0x8d   :  { %v1810_v49 = vpop.eup %1809  ;;  %v545_v39 = vadd.f32 1.0, %v1808_v40  ;;  %1835 = vpow2.f32 %v1276_v46 }
  0x8e   :  { %v1812_v20 = vpop.eup %1811  ;;  %1523 = vmatmul.mubr.bf16.gmra.mxu0 %v751_v36  ;;  %v767_v31 = vpack.c.bf16 %v731_v56, %v730_v16  ;;  %v700_v19 = vmul.f32 %v1810_v49, %v2345_v52  ;;  %1837 = vpow2.f32 %v1277_v8 }
  0x8f   :  { %v1814_v0 = vpop.eup %1813  ;;  %v701_v1 = vmul.f32 %v1812_v20, %v2348_v23  ;;  %1839 = vrcp.f32 %v545_v39 }
  0x90   :  { %v1816_v33 = vpop.eup %1815  ;;  %1555 = vmatmul.mubr.bf16.gmra.mxu1 %v767_v31  ;;  %v732_v54 = vmul.f32 %v1814_v0, %v2372_v5 }
  0x91   :  { %v1818_v35 = vpop.eup %1817  ;;  %v752_v4 = vpack.c.bf16 %v701_v1, %v700_v19  ;;  %v733_v3 = vmul.f32 %v1816_v33, %v2375_v61 }
  0x92   :  { %v1820_v53 = vpop.eup %1819  ;;  %v702_v47 = vmul.f32 %v1818_v35, %v2388_v50 }
  0x93   :  { %v1822_v44 = vpop.eup %1821  ;;  %1526 = vmatprep.mubr.bf16.mxu0 %v752_v4  ;;  %v768_v13 = vpack.c.bf16 %v733_v3, %v732_v54  ;;  %v703_v52 = vmul.f32 %v1820_v53, %v2391_v57 }
  0x94   :  { %v1824_v62 = vpop.eup %1823  ;;  %v734_v23 = vmul.f32 %v1822_v44, %v2405_v63 }
  0x95   :  { %v1826_v42 = vpop.eup %1825  ;;  %1558 = vmatprep.mubr.bf16.mxu1 %v768_v13  ;;  %v753_v38 = vpack.c.bf16 %v703_v52, %v702_v47  ;;  %v735_v5 = vmul.f32 %v1824_v62, %v2409_v10 }
  0x96   :  { %v1828_v32 = vpop.eup %1827  ;;  %v704_v45 = vmul.f32 %v1826_v42, %v2416_v22 }
  0x97   :  { %v1830_v61 = vpop.eup %1829  ;;  %1527 = vmatmul.mubr.bf16.gmra.mxu0 %v753_v38  ;;  %v769_v48 = vpack.c.bf16 %v735_v5, %v734_v23  ;;  %v705_v50 = vmul.f32 %v1828_v32, %v2426_v41 }
  0x98   :  { %v1832_v24 = vpop.eup %1831  ;;  %v514_v59 = vadd.f32 1.0, %v1830_v61 }
  0x99   :  { %v1834_v7 = vpop.eup %1833  ;;  %1559 = vmatmul.mubr.bf16.gmra.mxu1 %v769_v48  ;;  %v754_v57 = vpack.c.bf16 %v705_v50, %v704_v45  ;;  %v736_v10 = vmul.f32 %v1832_v24, %v2438_v17 }
  0x9a   :  { %v1836_v58 = vpop.eup %1835  ;;  %v515_v63 = vadd.f32 1.0, %v1834_v7  ;;  %1841 = vrcp.f32 %v514_v59 }
  0x9b   :  { %v1838_v29 = vpop.eup %1837  ;;  %1530 = vmatprep.mubr.bf16.mxu0 %v754_v57  ;;  %v546_v55 = vadd.f32 1.0, %v1836_v58 }
  0x9c   :  { %v1840_v60 = vpop.eup %1839  ;;  %1843 = vrcp.f32 %v515_v63  ;;  %v547_v22 = vadd.f32 1.0, %v1838_v29 }
  0x9d   :  { %v737_v21 = vmul.f32 %v1840_v60, %v2445_v51  ;;  %1845 = vrcp.f32 %v546_v55  ;;  %v2496_v51 = vld [vmem:[%s2569_s4] ss:$0 sm:$0xff]  ;;  %s1873_s4 = smov [#allocation2]  }
  0x9e   :  { %1847 = vrcp.f32 %v547_v22  ;;  %s1201_s28 = sshll.u32 %s1873_s4, 4  ;;  %s1202_s28 = int_to_ptr.vmem [resolvable:$true] %s1201_s28 }
  0x9f   :  { %v770_v41 = vpack.c.bf16 %v737_v21, %v736_v10  ;;  %s1851_s29 = scalar_lea.vmem %s1202_s28, 8192  ;;  %p1856_p1 = scmp.lt.s32.totalorder %s1202_s28, %s1202_s28 }
  0xa0   :  { %p1852_p0 = scmp.ne.s32.totalorder %s1202_s28, %s1851_s29  ;;  %p1857_p2 = scmp.lt.s32.totalorder %s1851_s29, %s1851_s29 }
  0xa1   :  { %1562 = vmatprep.mubr.bf16.mxu1 %v770_v41 }
  0xa2   :  { %p1858_p3 = por %p1857_p2, %p1856_p1 }
  0xa4   :  { %p1859_p4 = pnand %p1858_p3, %p1852_p0 }
  0xa7   :  { %v1842_v37 = vpop.eup %1841 }
  0xa8   :  { %v706_v26 = vmul.f32 %v1842_v37, %v2457_v12 }
  0xa9   :  { %v1844_v18 = vpop.eup %1843 }
  0xaa   :  { %v1846_v30 = vpop.eup %1845  ;;  %v707_v6 = vmul.f32 %v1844_v18, %v2461_v43 }
  0xab   :  { %v1848_v25 = vpop.eup %1847  ;;  %v738_v17 = vmul.f32 %v1846_v30, %v2464_v15 }
  0xac   :  { %v755_v28 = vpack.c.bf16 %v707_v6, %v706_v26  ;;  %v739_v34 = vmul.f32 %v1848_v25, %v2468_v9 }
  0xae   :  { %1531 = vmatmul.mubr.bf16.gmra.mxu0 %v755_v28  ;;  %v771_v14 = vpack.c.bf16 %v739_v34, %v738_v17 }
  0xb0   :  { %1563 = vmatmul.mubr.bf16.gmra.mxu1 %v771_v14 }
  0xf7   :  { %v1504_v46 = vpop.f32.mrf.mxu0 }
  0xf8   :  { %v886_v12 = vadd.f32 %v1504_v46, %v2496_v51 }
  0xf9   :  { %v1536_v27 = vpop.f32.mrf.mxu1  ;;  %v877_v11 = vpop.f32.mrf.mxu0 }
  0xfa   :  { %1134 = vst [vmem:[#allocation2 + $0x10] sm:$0xff] %v886_v12  ;;  %v1014_v43 = vadd.f32 %v1536_v27, %v2496_v51  ;;  %v878_v15 = vadd.f32 %v2496_v51, %v877_v11 }
  0xfb   :  { %v1005_v8 = vpop.f32.mrf.mxu1  ;;  %v1505_v9 = vpop.f32.mrf.mxu0 }
  0xfc   :  { %1166 = vst [vmem:[#allocation2 + $0x110] sm:$0xff] %v1014_v43  ;;  %1132 = vst [vmem:[#allocation2] sm:$0xff] %v878_v15  ;;  %v1006_v2 = vadd.f32 %v2496_v51, %v1005_v8  ;;  %v889_v16 = vadd.f32 %v1505_v9, %v2496_v51 }
  0xfd   :  { %v1537_v40 = vpop.f32.mrf.mxu1  ;;  %v880_v36 = vpop.f32.mrf.mxu0 }
  0xfe   :  { %1164 = vst [vmem:[#allocation2 + $0x100] sm:$0xff] %v1006_v2  ;;  %1135 = vst [vmem:[#allocation2 + $0x18] sm:$0xff] %v889_v16  ;;  %v1017_v56 = vadd.f32 %v1537_v40, %v2496_v51  ;;  %v881_v49 = vadd.f32 %v2496_v51, %v880_v36 }
  0xff   :  { %v1008_v39 = vpop.f32.mrf.mxu1  ;;  %v1508_v20 = vpop.f32.mrf.mxu0 }
 0x100   :  { %1167 = vst [vmem:[#allocation2 + $0x118] sm:$0xff] %v1017_v56  ;;  %1133 = vst [vmem:[#allocation2 + $0x8] sm:$0xff] %v881_v49  ;;  %v1009_v31 = vadd.f32 %v2496_v51, %v1008_v39  ;;  %v902_v19 = vadd.f32 %v1508_v20, %v2496_v51 }
 0x101   :  { %v893_v0 = vpop.f32.mrf.mxu0 }
 0x102   :  { %1165 = vst [vmem:[#allocation2 + $0x108] sm:$0xff] %v1009_v31  ;;  %1138 = vst [vmem:[#allocation2 + $0x30] sm:$0xff] %v902_v19  ;;  %v894_v1 = vadd.f32 %v2496_v51, %v893_v0 }
 0x103   :  { %v1509_v33 = vpop.f32.mrf.mxu0 }
 0x104   :  { %1136 = vst [vmem:[#allocation2 + $0x20] sm:$0xff] %v894_v1  ;;  %v905_v54 = vadd.f32 %v1509_v33, %v2496_v51 }
 0x105   :  { %v896_v35 = vpop.f32.mrf.mxu0 }
 0x106   :  { %1139 = vst [vmem:[#allocation2 + $0x38] sm:$0xff] %v905_v54  ;;  %v897_v4 = vadd.f32 %v2496_v51, %v896_v35 }
 0x108   :  { %1137 = vst [vmem:[#allocation2 + $0x28] sm:$0xff] %v897_v4 }
 0x110   :  { %v1540_v3 = vpop.f32.mrf.mxu1 }
 0x111   :  { %v1030_v53 = vadd.f32 %v1540_v3, %v2496_v51 }
 0x112   :  { %v1021_v47 = vpop.f32.mrf.mxu1 }
 0x113   :  { %1170 = vst [vmem:[#allocation2 + $0x130] sm:$0xff] %v1030_v53  ;;  %v1022_v44 = vadd.f32 %v2496_v51, %v1021_v47 }
 0x114   :  { %v1541_v13 = vpop.f32.mrf.mxu1 }
 0x115   :  { %1168 = vst [vmem:[#allocation2 + $0x120] sm:$0xff] %v1022_v44  ;;  %v1033_v52 = vadd.f32 %v1541_v13, %v2496_v51 }
 0x116   :  { %v1024_v62 = vpop.f32.mrf.mxu1 }
 0x117   :  { %1171 = vst [vmem:[#allocation2 + $0x138] sm:$0xff] %v1033_v52  ;;  %v1025_v23 = vadd.f32 %v2496_v51, %v1024_v62  ;;  %v1512_v42 = vpop.f32.mrf.mxu0 }
 0x118   :  { %v918_v38 = vadd.f32 %v1512_v42, %v2496_v51 }
 0x119   :  { %1169 = vst [vmem:[#allocation2 + $0x128] sm:$0xff] %v1025_v23  ;;  %v1544_v5 = vpop.f32.mrf.mxu1  ;;  %v909_v32 = vpop.f32.mrf.mxu0 }
 0x11a   :  { %1142 = vst [vmem:[#allocation2 + $0x50] sm:$0xff] %v918_v38  ;;  %v1046_v45 = vadd.f32 %v1544_v5, %v2496_v51  ;;  %v910_v61 = vadd.f32 %v2496_v51, %v909_v32 }
 0x11b   :  { %v1037_v48 = vpop.f32.mrf.mxu1  ;;  %v1513_v50 = vpop.f32.mrf.mxu0 }
 0x11c   :  { %1174 = vst [vmem:[#allocation2 + $0x150] sm:$0xff] %v1046_v45  ;;  %1140 = vst [vmem:[#allocation2 + $0x40] sm:$0xff] %v910_v61  ;;  %v1038_v24 = vadd.f32 %v2496_v51, %v1037_v48  ;;  %v921_v59 = vadd.f32 %v1513_v50, %v2496_v51 }
 0x11d   :  { %v1545_v7 = vpop.f32.mrf.mxu1  ;;  %v912_v57 = vpop.f32.mrf.mxu0 }
 0x11e   :  { %1172 = vst [vmem:[#allocation2 + $0x140] sm:$0xff] %v1038_v24  ;;  %1143 = vst [vmem:[#allocation2 + $0x58] sm:$0xff] %v921_v59  ;;  %v1049_v58 = vadd.f32 %v1545_v7, %v2496_v51  ;;  %v913_v63 = vadd.f32 %v2496_v51, %v912_v57 }
 0x11f   :  { %v1040_v29 = vpop.f32.mrf.mxu1  ;;  %v1516_v10 = vpop.f32.mrf.mxu0 }
 0x120   :  { %1175 = vst [vmem:[#allocation2 + $0x158] sm:$0xff] %v1049_v58  ;;  %1141 = vst [vmem:[#allocation2 + $0x48] sm:$0xff] %v913_v63  ;;  %v1041_v55 = vadd.f32 %v2496_v51, %v1040_v29  ;;  %v934_v60 = vadd.f32 %v1516_v10, %v2496_v51 }
 0x121   :  { %v925_v22 = vpop.f32.mrf.mxu0 }
 0x122   :  { %1173 = vst [vmem:[#allocation2 + $0x148] sm:$0xff] %v1041_v55  ;;  %1146 = vst [vmem:[#allocation2 + $0x70] sm:$0xff] %v934_v60  ;;  %v926_v21 = vadd.f32 %v2496_v51, %v925_v22 }
 0x123   :  { %v1517_v41 = vpop.f32.mrf.mxu0 }
 0x124   :  { %1144 = vst [vmem:[#allocation2 + $0x60] sm:$0xff] %v926_v21  ;;  %v937_v37 = vadd.f32 %v1517_v41, %v2496_v51 }
 0x125   :  { %v928_v26 = vpop.f32.mrf.mxu0 }
 0x126   :  { %1147 = vst [vmem:[#allocation2 + $0x78] sm:$0xff] %v937_v37  ;;  %v929_v18 = vadd.f32 %v2496_v51, %v928_v26 }
 0x128   :  { %1145 = vst [vmem:[#allocation2 + $0x68] sm:$0xff] %v929_v18 }
 0x130   :  { %v1548_v30 = vpop.f32.mrf.mxu1 }
 0x131   :  { %v1062_v6 = vadd.f32 %v1548_v30, %v2496_v51 }
 0x132   :  { %v1053_v25 = vpop.f32.mrf.mxu1 }
 0x133   :  { %1178 = vst [vmem:[#allocation2 + $0x170] sm:$0xff] %v1062_v6  ;;  %v1054_v17 = vadd.f32 %v2496_v51, %v1053_v25 }
 0x134   :  { %v1549_v28 = vpop.f32.mrf.mxu1 }
 0x135   :  { %1176 = vst [vmem:[#allocation2 + $0x160] sm:$0xff] %v1054_v17  ;;  %v1065_v34 = vadd.f32 %v1549_v28, %v2496_v51 }
 0x136   :  { %v1056_v14 = vpop.f32.mrf.mxu1 }
 0x137   :  { %1179 = vst [vmem:[#allocation2 + $0x178] sm:$0xff] %v1065_v34  ;;  %v1057_v46 = vadd.f32 %v2496_v51, %v1056_v14  ;;  %v1520_v12 = vpop.f32.mrf.mxu0 }
 0x138   :  { %v950_v27 = vadd.f32 %v1520_v12, %v2496_v51 }
 0x139   :  { %1177 = vst [vmem:[#allocation2 + $0x168] sm:$0xff] %v1057_v46  ;;  %v1552_v11 = vpop.f32.mrf.mxu1  ;;  %v941_v43 = vpop.f32.mrf.mxu0 }
 0x13a   :  { %1150 = vst [vmem:[#allocation2 + $0x90] sm:$0xff] %v950_v27  ;;  %v1078_v15 = vadd.f32 %v1552_v11, %v2496_v51  ;;  %v942_v8 = vadd.f32 %v2496_v51, %v941_v43 }
 0x13b   :  { %v1069_v9 = vpop.f32.mrf.mxu1  ;;  %v1521_v2 = vpop.f32.mrf.mxu0 }
 0x13c   :  { %1182 = vst [vmem:[#allocation2 + $0x190] sm:$0xff] %v1078_v15  ;;  %1148 = vst [vmem:[#allocation2 + $0x80] sm:$0xff] %v942_v8  ;;  %v1070_v16 = vadd.f32 %v2496_v51, %v1069_v9  ;;  %v953_v40 = vadd.f32 %v1521_v2, %v2496_v51 }
 0x13d   :  { %v1553_v36 = vpop.f32.mrf.mxu1  ;;  %v944_v56 = vpop.f32.mrf.mxu0 }
 0x13e   :  { %1180 = vst [vmem:[#allocation2 + $0x180] sm:$0xff] %v1070_v16  ;;  %1151 = vst [vmem:[#allocation2 + $0x98] sm:$0xff] %v953_v40  ;;  %v1081_v49 = vadd.f32 %v1553_v36, %v2496_v51  ;;  %v945_v39 = vadd.f32 %v2496_v51, %v944_v56 }
 0x13f   :  { %v1072_v20 = vpop.f32.mrf.mxu1 }
 0x140   :  { %1183 = vst [vmem:[#allocation2 + $0x198] sm:$0xff] %v1081_v49  ;;  %1149 = vst [vmem:[#allocation2 + $0x88] sm:$0xff] %v945_v39  ;;  %v1073_v31 = vadd.f32 %v2496_v51, %v1072_v20 }
 0x142   :  { %1181 = vst [vmem:[#allocation2 + $0x188] sm:$0xff] %v1073_v31 }
 0x14e   :  { %v1524_v19 = vpop.f32.mrf.mxu0 }
 0x14f   :  { %v966_v0 = vadd.f32 %v1524_v19, %v2496_v51 }
 0x150   :  { %v1556_v1 = vpop.f32.mrf.mxu1  ;;  %v957_v33 = vpop.f32.mrf.mxu0 }
 0x151   :  { %1154 = vst [vmem:[#allocation2 + $0xb0] sm:$0xff] %v966_v0  ;;  %v1094_v54 = vadd.f32 %v1556_v1, %v2496_v51  ;;  %v958_v35 = vadd.f32 %v2496_v51, %v957_v33 }
 0x152   :  { %v1085_v4 = vpop.f32.mrf.mxu1  ;;  %v1525_v3 = vpop.f32.mrf.mxu0 }
 0x153   :  { %1186 = vst [vmem:[#allocation2 + $0x1b0] sm:$0xff] %v1094_v54  ;;  %1152 = vst [vmem:[#allocation2 + $0xa0] sm:$0xff] %v958_v35  ;;  %v1086_v53 = vadd.f32 %v2496_v51, %v1085_v4  ;;  %v969_v47 = vadd.f32 %v1525_v3, %v2496_v51 }
 0x154   :  { %v1557_v44 = vpop.f32.mrf.mxu1  ;;  %v960_v13 = vpop.f32.mrf.mxu0 }
 0x155   :  { %1184 = vst [vmem:[#allocation2 + $0x1a0] sm:$0xff] %v1086_v53  ;;  %1155 = vst [vmem:[#allocation2 + $0xb8] sm:$0xff] %v969_v47  ;;  %v1097_v52 = vadd.f32 %v1557_v44, %v2496_v51  ;;  %v961_v62 = vadd.f32 %v2496_v51, %v960_v13 }
 0x156   :  { %v1088_v23 = vpop.f32.mrf.mxu1 }
 0x157   :  { %1187 = vst [vmem:[#allocation2 + $0x1b8] sm:$0xff] %v1097_v52  ;;  %1153 = vst [vmem:[#allocation2 + $0xa8] sm:$0xff] %v961_v62  ;;  %v1089_v42 = vadd.f32 %v2496_v51, %v1088_v23  ;;  %v1528_v38 = vpop.f32.mrf.mxu0 }
 0x158   :  { %v982_v5 = vadd.f32 %v1528_v38, %v2496_v51 }
 0x159   :  { %1185 = vst [vmem:[#allocation2 + $0x1a8] sm:$0xff] %v1089_v42  ;;  %v1560_v32 = vpop.f32.mrf.mxu1  ;;  %v973_v45 = vpop.f32.mrf.mxu0 }
 0x15a   :  { %1158 = vst [vmem:[#allocation2 + $0xd0] sm:$0xff] %v982_v5  ;;  %v1110_v61 = vadd.f32 %v1560_v32, %v2496_v51  ;;  %v974_v48 = vadd.f32 %v2496_v51, %v973_v45 }
 0x15b   :  { %v1101_v50 = vpop.f32.mrf.mxu1  ;;  %v1529_v24 = vpop.f32.mrf.mxu0 }
 0x15c   :  { %1190 = vst [vmem:[#allocation2 + $0x1d0] sm:$0xff] %v1110_v61  ;;  %1156 = vst [vmem:[#allocation2 + $0xc0] sm:$0xff] %v974_v48  ;;  %v1102_v59 = vadd.f32 %v2496_v51, %v1101_v50  ;;  %v985_v7 = vadd.f32 %v1529_v24, %v2496_v51 }
 0x15d   :  { %v1561_v57 = vpop.f32.mrf.mxu1  ;;  %v976_v58 = vpop.f32.mrf.mxu0 }
 0x15e   :  { %1188 = vst [vmem:[#allocation2 + $0x1c0] sm:$0xff] %v1102_v59  ;;  %1159 = vst [vmem:[#allocation2 + $0xd8] sm:$0xff] %v985_v7  ;;  %v1113_v63 = vadd.f32 %v1561_v57, %v2496_v51  ;;  %v977_v29 = vadd.f32 %v2496_v51, %v976_v58 }
 0x15f   :  { %v1104_v10 = vpop.f32.mrf.mxu1 }
 0x160   :  { %1191 = vst [vmem:[#allocation2 + $0x1d8] sm:$0xff] %v1113_v63  ;;  %1157 = vst [vmem:[#allocation2 + $0xc8] sm:$0xff] %v977_v29  ;;  %v1105_v55 = vadd.f32 %v2496_v51, %v1104_v10 }
 0x162   :  { %1189 = vst [vmem:[#allocation2 + $0x1c8] sm:$0xff] %v1105_v55 }
 0x16e   :  { %v1532_v60 = vpop.f32.mrf.mxu0 }
 0x16f   :  { %v998_v22 = vadd.f32 %v1532_v60, %v2496_v51 }
 0x170   :  { %v1564_v21 = vpop.f32.mrf.mxu1  ;;  %v989_v41 = vpop.f32.mrf.mxu0 }
 0x171   :  { %1162 = vst [vmem:[#allocation2 + $0xf0] sm:$0xff] %v998_v22  ;;  %v1126_v37 = vadd.f32 %v1564_v21, %v2496_v51  ;;  %v990_v26 = vadd.f32 %v2496_v51, %v989_v41 }
 0x172   :  { %v1117_v18 = vpop.f32.mrf.mxu1  ;;  %v1533_v30 = vpop.f32.mrf.mxu0 }
 0x173   :  { %1194 = vst [vmem:[#allocation2 + $0x1f0] sm:$0xff] %v1126_v37  ;;  %1160 = vst [vmem:[#allocation2 + $0xe0] sm:$0xff] %v990_v26  ;;  %v1118_v6 = vadd.f32 %v2496_v51, %v1117_v18  ;;  %v1001_v25 = vadd.f32 %v1533_v30, %v2496_v51 }
 0x174   :  { %v1565_v17 = vpop.f32.mrf.mxu1  ;;  %v992_v28 = vpop.f32.mrf.mxu0 }
 0x175   :  { %1192 = vst [vmem:[#allocation2 + $0x1e0] sm:$0xff] %v1118_v6  ;;  %1163 = vst [vmem:[#allocation2 + $0xf8] sm:$0xff] %v1001_v25  ;;  %v1129_v34 = vadd.f32 %v1565_v17, %v2496_v51  ;;  %v993_v14 = vadd.f32 %v2496_v51, %v992_v28 }
 0x176   :  { %v1120_v46 = vpop.f32.mrf.mxu1 }
 0x177   :  { %1195 = vst [vmem:[#allocation2 + $0x1f8] sm:$0xff] %v1129_v34  ;;  %1161 = vst [vmem:[#allocation2 + $0xe8] sm:$0xff] %v993_v14  ;;  %v1121_v12 = vadd.f32 %v2496_v51, %v1120_v46 }
 0x179   :  { %1193 = vst [vmem:[#allocation2 + $0x1e8] sm:$0xff] %v1121_v12 }
 0x17a   :  { %1862 = shalt.err (!%p1859_p4)
}
 0x17b   :  { %s1874_s30 = smov 128   ;;  %s1875_s6 = smov 8  }
 0x17c   :  { %1207 = dma.vmem_to_hbm [thread:$0]  %s1202_s28, 8192, %s2570_s5, [#allocation3], %s1874_s30, %s1874_s30, %s1875_s6  }
 0x17d   :  { %1871 = dma.done.wait [#allocation3], 8192  }
 0x17e   :  { %1872 = vsyncadd [#allocation3], 4294959104 }
 0x17f   :  { %1211 = vsyncpa [#allocation3], 1 }

</bundles_post_ra>
